<compile_context>
chip_gen: v7x
topology: tpu7x:2x2x1
jax: 0.10.0
libtpu: 0.0.40
codegen_flags: <defaults>
</compile_context>

<pallas_src>
import functools

import jax
import jax.numpy as jnp
from jax.experimental import pallas as pl
from jax.experimental.pallas import tpu as pltpu


def _round_up(x, m):
    return ((x + m - 1) // m) * m


def _gnn_kernel(a_in_ref, a_out_ref, h_ref,
                w_edge_ref, b_edge_ref, b_io_ref,
                w_gi_ref, b_gi_ref, w_gh_ref, b_gh_ref,
                out_ref, *, step, hp):
    f32 = jnp.float32

    # Load everything grid-invariant ONCE (hoisted out of the step loop).
    A_in = a_in_ref[0]            # (Rp, Rp)  block-diagonal, lane-dense
    A_out = a_out_ref[0]          # (Rp, Rp)
    w_edge = w_edge_ref[...]      # (Hp, 2Hp)  [w_edge_in^T | w_edge_out^T]
    b_edge = b_edge_ref[...]      # (1, 2Hp)
    b_io = b_io_ref[...]          # (1, 2Hp)   [b_iah | b_oah]
    w_gi = w_gi_ref[...]          # (2Hp, 3Hp) rows: [in|out] halves, cols: r,i,n
    b_gi = b_gi_ref[...]          # (1, 3Hp)
    w_gh = w_gh_ref[...]          # (Hp, 3Hp)
    b_gh = b_gh_ref[...]          # (1, 3Hp)

    h0 = h_ref[0].astype(f32)     # (Rp, Hp)

    def cell(h):
        # Both edge projections in one wide matmul.
        edge = jnp.dot(h, w_edge, preferred_element_type=f32) + b_edge   # (Rp, 2Hp)
        e_in = edge[:, :hp]                                              # aligned slices
        e_out = edge[:, hp:]

        # Block-diagonal adjacency propagation (lane-dense A, K = Rp).
        inp_in = jnp.dot(A_in, e_in, preferred_element_type=f32)         # (Rp, Hp)
        inp_out = jnp.dot(A_out, e_out, preferred_element_type=f32)      # (Rp, Hp)

        # One wide dot for all three input gates, one for all hidden gates.
        inputs = jnp.concatenate([inp_in, inp_out], axis=1) + b_io       # (Rp, 2Hp)
        gi = jnp.dot(inputs, w_gi, preferred_element_type=f32) + b_gi    # (Rp, 3Hp)
        gh = jnp.dot(h, w_gh, preferred_element_type=f32) + b_gh         # (Rp, 3Hp)

        i_r, i_i, i_n = gi[:, :hp], gi[:, hp:2 * hp], gi[:, 2 * hp:]
        h_r, h_i, h_n = gh[:, :hp], gh[:, hp:2 * hp], gh[:, 2 * hp:]

        resetgate = jax.nn.sigmoid(i_r + h_r)
        inputgate = jax.nn.sigmoid(i_i + h_i)
        newgate = jnp.tanh(i_n + resetgate * h_n)
        return newgate + inputgate * (h - newgate)

    if step <= 4:
        h = h0
        for _ in range(step):          # static -> fully unrolled
            h = cell(h)
    else:
        # Bounded code size / vreg pressure for large step.
        h = jax.lax.fori_loop(0, step, lambda _, hh: cell(hh), h0, unroll=2)

    out_ref[0] = h.astype(out_ref.dtype)


def gnn_forward(A, hidden, params, step=1, block_b=None):
    """GNN forward (`step` fused GNNCell iterations). A: (B,N,2N); hidden: (B,N,H)."""
    B, N, H = hidden.shape
    assert A.shape == (B, N, 2 * N)
    f32 = jnp.float32

    Hp = _round_up(H, 128)              # lane-dense hidden width
    # Batch elements per grid step. Default: whole batch in one block (tiny
    # shapes are launch/MXU-push bound); tune so bt*N >= ~256 when B is large
    # to fill the MXU and split across v7x's two TensorCores.
    bt = B if block_b is None else block_b
    assert B % bt == 0
    G = B // bt
    R = bt * N                          # valid flattened rows per block
    Rp = _round_up(R, 128)              # lane-dense padded row count

    # ---- weights: fused, pre-transposed, zero-padded to Hp tiles ----
    w_ih = params["w_ih"].astype(f32)   # (3H, 2H)
    w_hh = params["w_hh"].astype(f32)   # (3H, H)
    b_ih = params["b_ih"].astype(f32)
    b_hh = params["b_hh"].astype(f32)

    w_edge = jnp.zeros((Hp, 2 * Hp), f32)
    w_edge = w_edge.at[:H, 0:H].set(params["w_edge_in"].T.astype(f32))
    w_edge = w_edge.at[:H, Hp:Hp + H].set(params["w_edge_out"].T.astype(f32))
    b_edge = jnp.zeros((1, 2 * Hp), f32)
    b_edge = b_edge.at[0, 0:H].set(params["b_edge_in"].astype(f32))
    b_edge = b_edge.at[0, Hp:Hp + H].set(params["b_edge_out"].astype(f32))

    b_io = jnp.zeros((1, 2 * Hp), f32)
    b_io = b_io.at[0, 0:H].set(params["b_iah"].astype(f32))
    b_io = b_io.at[0, Hp:Hp + H].set(params["b_oah"].astype(f32))

    wT_ih = w_ih.T                       # (2H, 3H): rows=[in|out], cols=[r|i|n]
    w_gi = jnp.zeros((2 * Hp, 3 * Hp), f32)
    for half in range(2):
        for g in range(3):
            w_gi = w_gi.at[half * Hp:half * Hp + H, g * Hp:g * Hp + H].set(
                wT_ih[half * H:(half + 1) * H, g * H:(g + 1) * H])
    wT_hh = w_hh.T                       # (H, 3H)
    w_gh = jnp.zeros((Hp, 3 * Hp), f32)
    for g in range(3):
        w_gh = w_gh.at[:H, g * Hp:g * Hp + H].set(wT_hh[:, g * H:(g + 1) * H])

    b_gi = jnp.zeros((1, 3 * Hp), f32)
    b_gh = jnp.zeros((1, 3 * Hp), f32)
    for g in range(3):
        b_gi = b_gi.at[0, g * Hp:g * Hp + H].set(b_ih[g * H:(g + 1) * H])
        b_gh = b_gh.at[0, g * Hp:g * Hp + H].set(b_hh[g * H:(g + 1) * H])

    # ---- adjacency: block-diagonal, lane-dense (Rp, Rp) per grid block ----
    A = A.astype(f32)
    A_in_r = A[:, :, :N].reshape(G, bt, N, N)
    A_out_r = A[:, :, N:2 * N].reshape(G, bt, N, N)
    eye_bt = jnp.eye(bt, dtype=f32)

    def blockdiag(Ar):
        blk = jnp.einsum("ij,gipq->gipjq", eye_bt, Ar).reshape(G, R, R)
        return jnp.zeros((G, Rp, Rp), f32).at[:, :R, :R].set(blk)

    A_in_blk = blockdiag(A_in_r)
    A_out_blk = blockdiag(A_out_r)

    hidden_p = jnp.zeros((G, Rp, Hp), f32).at[:, :R, :H].set(
        hidden.astype(f32).reshape(G, R, H))

    kernel = functools.partial(_gnn_kernel, step=step, hp=Hp)

    def rep(shape):                      # grid-invariant (weight/bias) spec
        return pl.BlockSpec(shape, lambda b: (0,) * len(shape))

    # Advisory cost estimate so XLA can schedule/overlap around this call.
    flops = 2 * step * G * (Rp * Hp * 2 * Hp        # edge projections
                            + 2 * Rp * Rp * Hp      # two adjacency dots
                            + Rp * 2 * Hp * 3 * Hp  # gi
                            + Rp * Hp * 3 * Hp)     # gh
    transcendentals = 3 * step * G * Rp * Hp
    bytes_accessed = 4 * (2 * G * Rp * Rp + 2 * G * Rp * Hp
                          + Hp * 2 * Hp + 2 * Hp * 3 * Hp + Hp * 3 * Hp
                          + 10 * Hp)

    out_p = pl.pallas_call(
        kernel,
        out_shape=jax.ShapeDtypeStruct((G, Rp, Hp), hidden.dtype),
        grid_spec=pltpu.PrefetchScalarGridSpec(
            num_scalar_prefetch=0,
            grid=(G,),
            in_specs=[
                pl.BlockSpec((1, Rp, Rp), lambda b: (b, 0, 0)),   # A_in  (block-diag)
                pl.BlockSpec((1, Rp, Rp), lambda b: (b, 0, 0)),   # A_out (block-diag)
                pl.BlockSpec((1, Rp, Hp), lambda b: (b, 0, 0)),   # hidden
                rep((Hp, 2 * Hp)), rep((1, 2 * Hp)),              # w_edge, b_edge
                rep((1, 2 * Hp)),                                 # b_io = [b_iah|b_oah]
                rep((2 * Hp, 3 * Hp)), rep((1, 3 * Hp)),          # w_gi, b_gi
                rep((Hp, 3 * Hp)), rep((1, 3 * Hp)),              # w_gh, b_gh
            ],
            out_specs=pl.BlockSpec((1, Rp, Hp), lambda b: (b, 0, 0)),
        ),
        compiler_params=pltpu.CompilerParams(
            dimension_semantics=("parallel",),
            vmem_limit_bytes=48 * 1024 * 1024),
        cost_estimate=pl.CostEstimate(
            flops=flops, transcendentals=transcendentals,
            bytes_accessed=bytes_accessed),
    )(A_in_blk, A_out_blk, hidden_p,
      w_edge, b_edge, b_io, w_gi, b_gi, w_gh, b_gh)

    return out_p[:, :R, :H].reshape(B, N, H)


def init_params(key, hidden_size):
    H = hidden_size
    ks = jax.random.split(key, 10)
    scale = 1.0 / jnp.sqrt(H)
    u = lambda k, shape: jax.random.uniform(k, shape, jnp.float32, -scale, scale)
    return {
        "w_ih": u(ks[0], (3 * H, 2 * H)),
        "w_hh": u(ks[1], (3 * H, H)),
        "b_ih": u(ks[2], (3 * H,)),
        "b_hh": u(ks[3], (3 * H,)),
        "b_iah": u(ks[4], (H,)),
        "b_oah": u(ks[5], (H,)),
        "w_edge_in": u(ks[6], (H, H)),
        "b_edge_in": u(ks[7], (H,)),
        "w_edge_out": u(ks[8], (H, H)),
        "b_edge_out": u(ks[9], (H,)),
    }


def gnn_forward_ref(A, hidden, params, step=1):
    """Pure-JAX reference mirroring the PyTorch forward."""
    N = A.shape[1]
    for _ in range(step):
        edge_in = hidden @ params["w_edge_in"].T + params["b_edge_in"]
        edge_out = hidden @ params["w_edge_out"].T + params["b_edge_out"]
        input_in = jnp.matmul(A[:, :, :N], edge_in) + params["b_iah"]
        input_out = jnp.matmul(A[:, :, N:2 * N], edge_out) + params["b_oah"]
        inputs = jnp.concatenate([input_in, input_out], axis=2)
        gi = inputs @ params["w_ih"].T + params["b_ih"]
        gh = hidden @ params["w_hh"].T + params["b_hh"]
        i_r, i_i, i_n = jnp.split(gi, 3, axis=2)
        h_r, h_i, h_n = jnp.split(gh, 3, axis=2)
        resetgate = jax.nn.sigmoid(i_r + h_r)
        inputgate = jax.nn.sigmoid(i_i + h_i)
        newgate = jnp.tanh(i_n + resetgate * h_n)
        hidden = newgate + inputgate * (hidden - newgate)
    return hidden


if __name__ == "__main__":
    B, N, H = 2, 8, 32
    STEP = 1

    key = jax.random.PRNGKey(0)
    k_a, k_h, k_p = jax.random.split(key, 3)

    A = jax.random.uniform(k_a, (B, N, 2 * N), jnp.float32)
    hidden = jax.random.normal(k_h, (B, N, H), jnp.float32)
    params = init_params(k_p, H)

    out = gnn_forward(A, hidden, params, step=STEP)
    out = jax.block_until_ready(out)

    ref = gnn_forward_ref(A, hidden, params, step=STEP)
    assert out.shape == (B, N, H)
    assert jnp.allclose(out, ref, atol=1e-5, rtol=1e-5), "mismatch vs reference"

    print("KERNEL_OK")
</pallas_src>

<mosaic_0001>
module attributes {stable_mosaic.version = 11 : i64} {
  func.func @_gnn_kernel(%arg0: i32, %arg1: memref<1x128x128xf32, #tpu.memory_space<vmem>>, %arg2: memref<1x128x128xf32, #tpu.memory_space<vmem>>, %arg3: memref<1x128x128xf32, #tpu.memory_space<vmem>>, %arg4: memref<128x256xf32, #tpu.memory_space<vmem>>, %arg5: memref<1x256xf32, #tpu.memory_space<vmem>>, %arg6: memref<1x256xf32, #tpu.memory_space<vmem>>, %arg7: memref<256x384xf32, #tpu.memory_space<vmem>>, %arg8: memref<1x384xf32, #tpu.memory_space<vmem>>, %arg9: memref<128x384xf32, #tpu.memory_space<vmem>>, %arg10: memref<1x384xf32, #tpu.memory_space<vmem>>, %arg11: memref<1x128x128xf32, #tpu.memory_space<vmem>>) attributes {dimension_semantics = [#tpu.dimension_semantics<parallel>], iteration_bounds = array<i64: 1>, scalar_prefetch = 0 : i64, scratch_operands = 0 : i64, tpu.core_type = #tpu.core_type<tc>, window_params = [{transform_indices = @transform_0, window_bounds = array<i64: 1, 128, 128>}, {transform_indices = @transform_1, window_bounds = array<i64: 1, 128, 128>}, {transform_indices = @transform_2, window_bounds = array<i64: 1, 128, 128>}, {pipeline_mode = #tpu.pipeline_mode<synchronous>, transform_indices = @transform_3, window_bounds = array<i64: 128, 256>}, {pipeline_mode = #tpu.pipeline_mode<synchronous>, transform_indices = @transform_4, window_bounds = array<i64: 1, 256>}, {pipeline_mode = #tpu.pipeline_mode<synchronous>, transform_indices = @transform_5, window_bounds = array<i64: 1, 256>}, {pipeline_mode = #tpu.pipeline_mode<synchronous>, transform_indices = @transform_6, window_bounds = array<i64: 256, 384>}, {pipeline_mode = #tpu.pipeline_mode<synchronous>, transform_indices = @transform_7, window_bounds = array<i64: 1, 384>}, {pipeline_mode = #tpu.pipeline_mode<synchronous>, transform_indices = @transform_8, window_bounds = array<i64: 128, 384>}, {pipeline_mode = #tpu.pipeline_mode<synchronous>, transform_indices = @transform_9, window_bounds = array<i64: 1, 384>}, {transform_indices = @transform_10, window_bounds = array<i64: 1, 128, 128>}]} {
    %c0 = arith.constant 0 : index
    %c0_0 = arith.constant 0 : index
    %c0_1 = arith.constant 0 : index
    %0 = vector.load %arg1[%c0, %c0_0, %c0_1] : memref<1x128x128xf32, #tpu.memory_space<vmem>>, vector<1x128x128xf32>
    %1 = vector.shape_cast %0 : vector<1x128x128xf32> to vector<128x128xf32>
    %c0_2 = arith.constant 0 : index
    %c0_3 = arith.constant 0 : index
    %c0_4 = arith.constant 0 : index
    %2 = vector.load %arg2[%c0_2, %c0_3, %c0_4] : memref<1x128x128xf32, #tpu.memory_space<vmem>>, vector<1x128x128xf32>
    %3 = vector.shape_cast %2 : vector<1x128x128xf32> to vector<128x128xf32>
    %c0_5 = arith.constant 0 : index
    %c0_6 = arith.constant 0 : index
    %4 = vector.load %arg4[%c0_5, %c0_6] : memref<128x256xf32, #tpu.memory_space<vmem>>, vector<128x256xf32>
    %c0_7 = arith.constant 0 : index
    %c0_8 = arith.constant 0 : index
    %5 = vector.load %arg5[%c0_7, %c0_8] : memref<1x256xf32, #tpu.memory_space<vmem>>, vector<1x256xf32>
    %c0_9 = arith.constant 0 : index
    %c0_10 = arith.constant 0 : index
    %6 = vector.load %arg6[%c0_9, %c0_10] : memref<1x256xf32, #tpu.memory_space<vmem>>, vector<1x256xf32>
    %c0_11 = arith.constant 0 : index
    %c0_12 = arith.constant 0 : index
    %7 = vector.load %arg7[%c0_11, %c0_12] : memref<256x384xf32, #tpu.memory_space<vmem>>, vector<256x384xf32>
    %c0_13 = arith.constant 0 : index
    %c0_14 = arith.constant 0 : index
    %8 = vector.load %arg8[%c0_13, %c0_14] : memref<1x384xf32, #tpu.memory_space<vmem>>, vector<1x384xf32>
    %c0_15 = arith.constant 0 : index
    %c0_16 = arith.constant 0 : index
    %9 = vector.load %arg9[%c0_15, %c0_16] : memref<128x384xf32, #tpu.memory_space<vmem>>, vector<128x384xf32>
    %c0_17 = arith.constant 0 : index
    %c0_18 = arith.constant 0 : index
    %10 = vector.load %arg10[%c0_17, %c0_18] : memref<1x384xf32, #tpu.memory_space<vmem>>, vector<1x384xf32>
    %c0_19 = arith.constant 0 : index
    %c0_20 = arith.constant 0 : index
    %c0_21 = arith.constant 0 : index
    %11 = vector.load %arg3[%c0_19, %c0_20, %c0_21] : memref<1x128x128xf32, #tpu.memory_space<vmem>>, vector<1x128x128xf32>
    %12 = vector.shape_cast %11 : vector<1x128x128xf32> to vector<128x128xf32>
    %cst = arith.constant dense<0.000000e+00> : vector<128x256xf32>
    %13 = tpu.matmul %12, %4, %cst {dimension_numbers = #tpu.dot_dimension_numbers<[1], [0], [0], [1], [0, 0, 1, 1], [], []>} : vector<128x128xf32>, vector<128x256xf32>, vector<128x256xf32> -> vector<128x256xf32>
    %14 = vector.broadcast %5 : vector<1x256xf32> to vector<128x256xf32>
    %15 = arith.addf %13, %14 : vector<128x256xf32>
    %16 = vector.extract_strided_slice %15 {offsets = [0, 0], sizes = [128, 128], strides = [1, 1]} : vector<128x256xf32> to vector<128x128xf32>
    %17 = vector.extract_strided_slice %15 {offsets = [0, 128], sizes = [128, 128], strides = [1, 1]} : vector<128x256xf32> to vector<128x128xf32>
    %cst_22 = arith.constant dense<0.000000e+00> : vector<128x128xf32>
    %18 = tpu.matmul %1, %16, %cst_22 {dimension_numbers = #tpu.dot_dimension_numbers<[1], [0], [0], [1], [0, 0, 1, 1], [], []>} : vector<128x128xf32>, vector<128x128xf32>, vector<128x128xf32> -> vector<128x128xf32>
    %cst_23 = arith.constant dense<0.000000e+00> : vector<128x128xf32>
    %19 = tpu.matmul %3, %17, %cst_23 {dimension_numbers = #tpu.dot_dimension_numbers<[1], [0], [0], [1], [0, 0, 1, 1], [], []>} : vector<128x128xf32>, vector<128x128xf32>, vector<128x128xf32> -> vector<128x128xf32>
    %20 = tpu.concatenate %18, %19 in 1 : vector<128x128xf32>, vector<128x128xf32> -> vector<128x256xf32>
    %21 = vector.broadcast %6 : vector<1x256xf32> to vector<128x256xf32>
    %22 = arith.addf %20, %21 : vector<128x256xf32>
    %cst_24 = arith.constant dense<0.000000e+00> : vector<128x384xf32>
    %23 = tpu.matmul %22, %7, %cst_24 {dimension_numbers = #tpu.dot_dimension_numbers<[1], [0], [0], [1], [0, 0, 1, 1], [], []>} : vector<128x256xf32>, vector<256x384xf32>, vector<128x384xf32> -> vector<128x384xf32>
    %24 = vector.broadcast %8 : vector<1x384xf32> to vector<128x384xf32>
    %25 = arith.addf %23, %24 : vector<128x384xf32>
    %cst_25 = arith.constant dense<0.000000e+00> : vector<128x384xf32>
    %26 = tpu.matmul %12, %9, %cst_25 {dimension_numbers = #tpu.dot_dimension_numbers<[1], [0], [0], [1], [0, 0, 1, 1], [], []>} : vector<128x128xf32>, vector<128x384xf32>, vector<128x384xf32> -> vector<128x384xf32>
    %27 = vector.broadcast %10 : vector<1x384xf32> to vector<128x384xf32>
    %28 = arith.addf %26, %27 : vector<128x384xf32>
    %29 = vector.extract_strided_slice %25 {offsets = [0, 0], sizes = [128, 128], strides = [1, 1]} : vector<128x384xf32> to vector<128x128xf32>
    %30 = vector.extract_strided_slice %25 {offsets = [0, 128], sizes = [128, 128], strides = [1, 1]} : vector<128x384xf32> to vector<128x128xf32>
    %31 = vector.extract_strided_slice %25 {offsets = [0, 256], sizes = [128, 128], strides = [1, 1]} : vector<128x384xf32> to vector<128x128xf32>
    %32 = vector.extract_strided_slice %28 {offsets = [0, 0], sizes = [128, 128], strides = [1, 1]} : vector<128x384xf32> to vector<128x128xf32>
    %33 = vector.extract_strided_slice %28 {offsets = [0, 128], sizes = [128, 128], strides = [1, 1]} : vector<128x384xf32> to vector<128x128xf32>
    %34 = vector.extract_strided_slice %28 {offsets = [0, 256], sizes = [128, 128], strides = [1, 1]} : vector<128x384xf32> to vector<128x128xf32>
    %35 = arith.addf %29, %32 : vector<128x128xf32>
    %36 = arith.negf %35 : vector<128x128xf32>
    %37 = math.exp %36 : vector<128x128xf32>
    %cst_26 = arith.constant 1.000000e+00 : f32
    %38 = vector.broadcast %cst_26 : f32 to vector<128x128xf32>
    %39 = arith.addf %38, %37 : vector<128x128xf32>
    %40 = arith.divf %38, %39 : vector<128x128xf32>
    %41 = arith.addf %30, %33 : vector<128x128xf32>
    %42 = arith.negf %41 : vector<128x128xf32>
    %43 = math.exp %42 : vector<128x128xf32>
    %cst_27 = arith.constant 1.000000e+00 : f32
    %44 = vector.broadcast %cst_27 : f32 to vector<128x128xf32>
    %45 = arith.addf %44, %43 : vector<128x128xf32>
    %46 = arith.divf %44, %45 : vector<128x128xf32>
    %47 = arith.mulf %40, %34 : vector<128x128xf32>
    %48 = arith.addf %31, %47 : vector<128x128xf32>
    %49 = math.tanh %48 : vector<128x128xf32>
    %50 = arith.subf %12, %49 : vector<128x128xf32>
    %51 = arith.mulf %46, %50 : vector<128x128xf32>
    %52 = arith.addf %49, %51 : vector<128x128xf32>
    %c0_28 = arith.constant 0 : index
    %c0_29 = arith.constant 0 : index
    %c0_30 = arith.constant 0 : index
    %53 = vector.load %arg11[%c0_28, %c0_29, %c0_30] : memref<1x128x128xf32, #tpu.memory_space<vmem>>, vector<1x128x128xf32>
    %54 = vector.shape_cast %53 : vector<1x128x128xf32> to vector<128x128xf32>
    %55 = vector.shape_cast %52 : vector<128x128xf32> to vector<1x128x128xf32>
    tpu.vector_store %arg11[%c0_28, %c0_29, %c0_30], %55 {strides = array<i32>} : memref<1x128x128xf32, #tpu.memory_space<vmem>>, vector<1x128x128xf32>,
    return
  }
  func.func @transform_0(%arg0: i32) -> (i32, i32, i32) {
    %c0_i32 = arith.constant 0 : i32
    %c0_i32_0 = arith.constant 0 : i32
    %c0_i32_1 = arith.constant 0 : i32
    return %arg0, %c0_i32, %c0_i32_0 : i32, i32, i32
  }
  func.func @transform_1(%arg0: i32) -> (i32, i32, i32) {
    %c0_i32 = arith.constant 0 : i32
    %c0_i32_0 = arith.constant 0 : i32
    %c0_i32_1 = arith.constant 0 : i32
    return %arg0, %c0_i32, %c0_i32_0 : i32, i32, i32
  }
  func.func @transform_2(%arg0: i32) -> (i32, i32, i32) {
    %c0_i32 = arith.constant 0 : i32
    %c0_i32_0 = arith.constant 0 : i32
    %c0_i32_1 = arith.constant 0 : i32
    return %arg0, %c0_i32, %c0_i32_0 : i32, i32, i32
  }
  func.func @transform_3(%arg0: i32) -> (i32, i32) {
    %c0_i32 = arith.constant 0 : i32
    %c0_i32_0 = arith.constant 0 : i32
    %c0_i32_1 = arith.constant 0 : i32
    return %c0_i32, %c0_i32_0 : i32, i32
  }
  func.func @transform_4(%arg0: i32) -> (i32, i32) {
    %c0_i32 = arith.constant 0 : i32
    %c0_i32_0 = arith.constant 0 : i32
    %c0_i32_1 = arith.constant 0 : i32
    return %c0_i32, %c0_i32_0 : i32, i32
  }
  func.func @transform_5(%arg0: i32) -> (i32, i32) {
    %c0_i32 = arith.constant 0 : i32
    %c0_i32_0 = arith.constant 0 : i32
    %c0_i32_1 = arith.constant 0 : i32
    return %c0_i32, %c0_i32_0 : i32, i32
  }
  func.func @transform_6(%arg0: i32) -> (i32, i32) {
    %c0_i32 = arith.constant 0 : i32
    %c0_i32_0 = arith.constant 0 : i32
    %c0_i32_1 = arith.constant 0 : i32
    return %c0_i32, %c0_i32_0 : i32, i32
  }
  func.func @transform_7(%arg0: i32) -> (i32, i32) {
    %c0_i32 = arith.constant 0 : i32
    %c0_i32_0 = arith.constant 0 : i32
    %c0_i32_1 = arith.constant 0 : i32
    return %c0_i32, %c0_i32_0 : i32, i32
  }
  func.func @transform_8(%arg0: i32) -> (i32, i32) {
    %c0_i32 = arith.constant 0 : i32
    %c0_i32_0 = arith.constant 0 : i32
    %c0_i32_1 = arith.constant 0 : i32
    return %c0_i32, %c0_i32_0 : i32, i32
  }
  func.func @transform_9(%arg0: i32) -> (i32, i32) {
    %c0_i32 = arith.constant 0 : i32
    %c0_i32_0 = arith.constant 0 : i32
    %c0_i32_1 = arith.constant 0 : i32
    return %c0_i32, %c0_i32_0 : i32, i32
  }
  func.func @transform_10(%arg0: i32) -> (i32, i32, i32) {
    %c0_i32 = arith.constant 0 : i32
    %c0_i32_0 = arith.constant 0 : i32
    %c0_i32_1 = arith.constant 0 : i32
    return %arg0, %c0_i32, %c0_i32_0 : i32, i32, i32
  }
}

</mosaic_0001>

<bundles_post_ra>
// kernel: tpu_custom_call.1
= control target key start
LH: loop header
LB: loop body
LE: loop exit
PB: predicated region body
PF: predicated region fallthrough
CT: control target
= control target key end

     0   :  { %15 = vsyncpa [#allocation3], 0  ;;  %s3600_s0 = inlined_call_operand.hbm [shape: f32[1,128,128], index: 0, kind: input, shape index: {}]   ;;  %s3601_s1 = inlined_call_operand.hbm [shape: f32[1,128,128], index: 1, kind: input, shape index: {}]   ;;  %s3602_s2 = inlined_call_operand.hbm [shape: f32[1,128,128], index: 2, kind: input, shape index: {}]   ;;  %s3603_s3 = inlined_call_operand.hbm [shape: f32[128,256], index: 3, kind: input, shape index: {}]   ;;  %s3604_s4 = inlined_call_operand.vmem [shape: f32[1,256], index: 4, kind: input, shape index: {}]   ;;  %s3605_s5 = inlined_call_operand.vmem [shape: f32[1,256], index: 5, kind: input, shape index: {}]   ;;  %s3606_s6 = inlined_call_operand.hbm [shape: f32[256,384], index: 6, kind: input, shape index: {}]   ;;  %s3607_s7 = inlined_call_operand.vmem [shape: f32[1,384], index: 7, kind: input, shape index: {}]   ;;  %s3608_s8 = inlined_call_operand.hbm [shape: f32[128,384], index: 8, kind: input, shape index: {}]   ;;  %s3609_s9 = inlined_call_operand.vmem [shape: f32[1,384], index: 9, kind: input, shape index: {}]   ;;  %s3610_s10 = inlined_call_operand.hbm [shape: f32[1,128,128], index: 10, kind: output, shape index: {}]  }
   0x1   :  { %16 = vsyncpa [#allocation6], 0 }
   0x2   :  { %17 = vsyncpa [#allocation9], 0 }
   0x3   :  { %18 = vsyncpa [#allocation12], 0 }
   0x4   :  { %19 = vsyncpa [#allocation4], 0  ;;  %s2933_s13 = smov [#allocation5]   ;;  %s2934_s15 = smov [#allocation8]  }
   0x5   :  { %s37_s14 = sshll.u32 %s2933_s13, 4  ;;  %s61_s16 = sshll.u32 %s2934_s15, 4  ;;  %s38_s14 = int_to_ptr.vmem [resolvable:$true] %s37_s14  ;;  %s3002_s16 = int_to_ptr.vmem [resolvable:$true] %s61_s16 }
   0x6   :  { %s2769_s19 = scalar_lea.hbm %s3601_s1, 2048 }
   0x7   :  { %p2770_p0 = scmp.ne.s32.totalorder %s3601_s1, %s2769_s19  ;;  %p2773_p1 = scmp.lt.u32.totalorder %s2769_s19, %s3601_s1 }
   0x9   :  { %p2775_p2 = pnand %p2773_p1, %p2770_p0 }
   0xb   :  { %2778 = shalt.err (!%p2775_p2)
}
   0xc   :  { %s2779_s24 = scalar_lea.vmem %s38_s14, 2048  ;;  %p2784_p4 = scmp.lt.s32.totalorder %s38_s14, %s38_s14 }
   0xd   :  { %p2780_p3 = scmp.ne.s32.totalorder %s38_s14, %s2779_s24  ;;  %p2785_p5 = scmp.lt.s32.totalorder %s2779_s24, %s2779_s24 }
   0xf   :  { %p2786_p6 = por %p2785_p5, %p2784_p4 }
  0x11   :  { %p2787_p7 = pnand %p2786_p6, %p2780_p3 }
  0x13   :  { %2790 = shalt.err (!%p2787_p7)
}
  0x14   :  { %s2935_s25 = smov 128   ;;  %s2936_s26 = smov 8  }
  0x15   :  { %43 = dma.hbm_to_vmem [thread:$0]  %s3601_s1, 2048, %s38_s14, [#allocation6], %s2935_s25, %s2935_s25, %s2936_s26  }
  0x16   :  { %s2791_s11 = scalar_lea.hbm %s3603_s3, 4096 }
  0x17   :  { %p2792_p8 = scmp.ne.s32.totalorder %s3603_s3, %s2791_s11  ;;  %p2795_p9 = scmp.lt.u32.totalorder %s2791_s11, %s3603_s3 }
  0x19   :  { %p2797_p10 = pnand %p2795_p9, %p2792_p8 }
  0x1b   :  { %2800 = shalt.err (!%p2797_p10)
}
  0x1c   :  { %s2801_s18 = scalar_lea.vmem %s3002_s16, 4096  ;;  %p2806_p12 = scmp.lt.s32.totalorder %s3002_s16, %s3002_s16 }
  0x1d   :  { %p2802_p11 = scmp.ne.s32.totalorder %s3002_s16, %s2801_s18  ;;  %p2807_p13 = scmp.lt.s32.totalorder %s2801_s18, %s2801_s18 }
  0x1f   :  { %p2808_p0 = por %p2807_p13, %p2806_p12 }
  0x21   :  { %p2809_p1 = pnand %p2808_p0, %p2802_p11 }
  0x23   :  { %2812 = shalt.err (!%p2809_p1)
}
  0x24   :  { %s2937_s1 = smov 256   ;;  %s2938_s14 = smov 16  }
  0x25   :  { %67 = dma.hbm_to_vmem [thread:$0]  %s3603_s3, 4096, %s3002_s16, [#allocation9], %s2937_s1, %s2937_s1, %s2938_s14  }
  0x26   :  { %s2939_s21 = smov [#allocation2]   ;;  %s2940_s23 = smov [#allocation7]  }
  0x27   :  { %s25_s22 = sshll.u32 %s2939_s21, 4  ;;  %s49_s24 = sshll.u32 %s2940_s23, 4  ;;  %s26_s22 = int_to_ptr.vmem [resolvable:$true] %s25_s22  ;;  %s3036_s24 = int_to_ptr.vmem [resolvable:$true] %s49_s24 }
  0x28   :  { %s2813_s29 = scalar_lea.hbm %s3600_s0, 2048 }
  0x29   :  { %p2814_p2 = scmp.ne.s32.totalorder %s3600_s0, %s2813_s29  ;;  %p2817_p3 = scmp.lt.u32.totalorder %s2813_s29, %s3600_s0 }
  0x2b   :  { %p2819_p4 = pnand %p2817_p3, %p2814_p2 }
  0x2d   :  { %2822 = shalt.err (!%p2819_p4)
}
  0x2e   :  { %s2823_s3 = scalar_lea.vmem %s26_s22, 2048  ;;  %p2828_p6 = scmp.lt.s32.totalorder %s26_s22, %s26_s22 }
  0x2f   :  { %p2824_p5 = scmp.ne.s32.totalorder %s26_s22, %s2823_s3  ;;  %p2829_p7 = scmp.lt.s32.totalorder %s2823_s3, %s2823_s3 }
  0x31   :  { %p2830_p8 = por %p2829_p7, %p2828_p6 }
  0x33   :  { %p2831_p9 = pnand %p2830_p8, %p2824_p5 }
  0x35   :  { %2834 = shalt.err (!%p2831_p9)
}
  0x36   :  { %31 = dma.hbm_to_vmem [thread:$0]  %s3600_s0, 2048, %s26_s22, [#allocation3], %s2935_s25, %s2935_s25, %s2936_s26  }
  0x37   :  { %s2835_s1 = scalar_lea.hbm %s3602_s2, 2048 }
  0x38   :  { %p2836_p10 = scmp.ne.s32.totalorder %s3602_s2, %s2835_s1  ;;  %p2839_p11 = scmp.lt.u32.totalorder %s2835_s1, %s3602_s2 }
  0x3a   :  { %p2841_p12 = pnand %p2839_p11, %p2836_p10 }
  0x3c   :  { %2844 = shalt.err (!%p2841_p12)
}
  0x3d   :  { %s2845_s23 = scalar_lea.vmem %s3036_s24, 2048  ;;  %p2850_p0 = scmp.lt.s32.totalorder %s3036_s24, %s3036_s24 }
  0x3e   :  { %p2846_p13 = scmp.ne.s32.totalorder %s3036_s24, %s2845_s23  ;;  %p2851_p1 = scmp.lt.s32.totalorder %s2845_s23, %s2845_s23 }
  0x40   :  { %p2852_p2 = por %p2851_p1, %p2850_p0 }
  0x42   :  { %p2853_p3 = pnand %p2852_p2, %p2846_p13 }
  0x44   :  { %2856 = shalt.err (!%p2853_p3)
}
  0x45   :  { %55 = dma.hbm_to_vmem [thread:$0]  %s3602_s2, 2048, %s3036_s24, [#allocation6], %s2935_s25, %s2935_s25, %s2936_s26  }
  0x46   :  { %s2941_s27 = smov [#allocation10]   ;;  %s2857_s11 = scalar_lea.hbm %s3606_s6, 12288 }
  0x47   :  { %s77_s28 = sshll.u32 %s2941_s27, 4  ;;  %p2858_p4 = scmp.ne.s32.totalorder %s3606_s6, %s2857_s11  ;;  %s78_s28 = int_to_ptr.vmem [resolvable:$true] %s77_s28 }
  0x48   :  { %p2861_p5 = scmp.lt.u32.totalorder %s2857_s11, %s3606_s6 }
  0x4a   :  { %p2863_p6 = pnand %p2861_p5, %p2858_p4 }
  0x4c   :  { %2866 = shalt.err (!%p2863_p6)
}
  0x4d   :  { %s2867_s15 = scalar_lea.vmem %s78_s28, 12288  ;;  %p2872_p8 = scmp.lt.s32.totalorder %s78_s28, %s78_s28 }
  0x4e   :  { %p2868_p7 = scmp.ne.s32.totalorder %s78_s28, %s2867_s15  ;;  %p2873_p9 = scmp.lt.s32.totalorder %s2867_s15, %s2867_s15 }
  0x50   :  { %p2874_p10 = por %p2873_p9, %p2872_p8 }
  0x52   :  { %p2875_p11 = pnand %p2874_p10, %p2868_p7 }
  0x54   :  { %2878 = shalt.err (!%p2875_p11)
}
  0x55   :  { %s2942_s2 = smov 384   ;;  %s2943_s24 = smov 24  }
  0x56   :  { %83 = dma.hbm_to_vmem [thread:$0]  %s3606_s6, 12288, %s78_s28, [#allocation9], %s2942_s2, %s2942_s2, %s2943_s24  }
  0x57   :  { %s2944_s1 = smov [#allocation11]   ;;  %s2879_s21 = scalar_lea.hbm %s3608_s8, 6144 }
  0x58   :  { %s91_s14 = sshll.u32 %s2944_s1, 4  ;;  %p2880_p12 = scmp.ne.s32.totalorder %s3608_s8, %s2879_s21  ;;  %s92_s14 = int_to_ptr.vmem [resolvable:$true] %s91_s14 }
  0x59   :  { %p2883_p13 = scmp.lt.u32.totalorder %s2879_s21, %s3608_s8 }
  0x5b   :  { %p2885_p0 = pnand %p2883_p13, %p2880_p12 }
  0x5d   :  { %2888 = shalt.err (!%p2885_p0)
}
  0x5e   :  { %s2889_s29 = scalar_lea.vmem %s92_s14, 6144  ;;  %p2894_p2 = scmp.lt.s32.totalorder %s92_s14, %s92_s14 }
  0x5f   :  { %p2890_p1 = scmp.ne.s32.totalorder %s92_s14, %s2889_s29  ;;  %p2895_p3 = scmp.lt.s32.totalorder %s2889_s29, %s2889_s29 }
  0x61   :  { %p2896_p4 = por %p2895_p3, %p2894_p2 }
  0x63   :  { %p2897_p5 = pnand %p2896_p4, %p2890_p1 }
  0x65   :  { %2900 = shalt.err (!%p2897_p5)
}
  0x66   :  { %97 = dma.hbm_to_vmem [thread:$0]  %s3608_s8, 6144, %s92_s14, [#allocation12], %s2942_s2, %s2942_s2, %s2943_s24  }
  0x67   :  { %2923 = dma.done.wait [#allocation3], 2048  }
  0x68   :  { %2924 = vsyncadd [#allocation3], 4294965248 }
  0x69   :  { %2925 = dma.done.wait [#allocation6], 4096  }
  0x6a   :  { %2926 = vsyncadd [#allocation6], 4294963200 }
  0x6b   :  { %2927 = dma.done.wait [#allocation9], 16384  }
  0x6c   :  { %2928 = vsyncadd [#allocation9], 4294950912 }
  0x6d   :  { %2929 = dma.done.wait [#allocation12], 6144  }
  0x6e   :  { %2930 = vsyncadd [#allocation12], 4294961152  ;;  %v2945_v0 = vmov 0.0   ;;  %v151_v1 = vld [vmem:[#allocation8 + $0x8] sm:$0xff]  ;;  %v153_v2 = vld [vmem:[#allocation8 + $0x18] sm:$0xff] }
  0x6f   :  { %421 = vmatprep.mubr.f32.mxu0 %v2945_v0  ;;  %v150_v3 = vld [vmem:[#allocation8] sm:$0xff]  ;;  %v2227_v4 = vpack.c.bf16 %v153_v2, %v151_v1  ;;  %v152_v5 = vld [vmem:[#allocation8 + $0x10] sm:$0xff]  ;;  %v155_v6 = vld [vmem:[#allocation8 + $0x28] sm:$0xff] }
  0x70   :  { %v157_v7 = vld [vmem:[#allocation8 + $0x38] sm:$0xff]  ;;  %v2229_v8 = vpack.c.bf16 %v152_v5, %v150_v3  ;;  %v154_v10 = vld [vmem:[#allocation8 + $0x20] sm:$0xff]  ;;  %v156_v11 = vld [vmem:[#allocation8 + $0x30] sm:$0xff]  ;;  %v347_v3 = vlaneseq }
  0x71   :  { %v2231_v9 = vpack.c.bf16 %v157_v7, %v155_v6  ;;  %v159_v12 = vld [vmem:[#allocation8 + $0x48] sm:$0xff]  ;;  %2228 = vmatprep.subr.bf16.mxu0 %v2227_v4  ;;  %v161_v13 = vld [vmem:[#allocation8 + $0x58] sm:$0xff]  ;;  %v2233_v14 = vpack.c.bf16 %v156_v11, %v154_v10  ;;  %v158_v16 = vld [vmem:[#allocation8 + $0x40] sm:$0xff] }
  0x72   :  { %2230 = vmatpush1.bf16.msra.mxu0 %v2229_v8  ;;  %v2235_v15 = vpack.c.bf16 %v161_v13, %v159_v12  ;;  %v160_v17 = vld [vmem:[#allocation8 + $0x50] sm:$0xff]  ;;  %v163_v18 = vld [vmem:[#allocation8 + $0x68] sm:$0xff]  ;;  %v165_v19 = vld [vmem:[#allocation8 + $0x78] sm:$0xff]  ;;  %v3113_v4 = vshrl.u32 %v347_v3, 7 }
  0x73   :  { %2232 = vmatprep.subr.bf16.mxu0 %v2231_v9  ;;  %v2237_v20 = vpack.c.bf16 %v160_v17, %v158_v16  ;;  %v2239_v21 = vpack.c.bf16 %v165_v19, %v163_v18  ;;  %v162_v22 = vld [vmem:[#allocation8 + $0x60] sm:$0xff]  ;;  %v164_v23 = vld [vmem:[#allocation8 + $0x70] sm:$0xff]  ;;  %v167_v24 = vld [vmem:[#allocation8 + $0x88] sm:$0xff] }
  0x74   :  { %v169_v25 = vld [vmem:[#allocation8 + $0x98] sm:$0xff]  ;;  %v2241_v26 = vpack.c.bf16 %v164_v23, %v162_v22  ;;  %v166_v28 = vld [vmem:[#allocation8 + $0x80] sm:$0xff]  ;;  %v168_v29 = vld [vmem:[#allocation8 + $0x90] sm:$0xff]  ;;  %v3116_v5 = vsub.s32 0, %v3113_v4  ;;  %v3122_v7 = vsub.s32 1, %v3113_v4 }
  0x75   :  { %v2243_v27 = vpack.c.bf16 %v169_v25, %v167_v24  ;;  %v171_v30 = vld [vmem:[#allocation8 + $0xa8] sm:$0xff]  ;;  %v173_v31 = vld [vmem:[#allocation8 + $0xb8] sm:$0xff]  ;;  %v2245_v32 = vpack.c.bf16 %v168_v29, %v166_v28  ;;  %v170_v34 = vld [vmem:[#allocation8 + $0xa0] sm:$0xff] }
  0x76   :  { %2234 = vmatpush1.bf16.msra.mxu0 %v2233_v14  ;;  %v2247_v33 = vpack.c.bf16 %v173_v31, %v171_v30  ;;  %v172_v35 = vld [vmem:[#allocation8 + $0xb0] sm:$0xff]  ;;  %v175_v36 = vld [vmem:[#allocation8 + $0xc8] sm:$0xff]  ;;  %v177_v37 = vld [vmem:[#allocation8 + $0xd8] sm:$0xff] }
  0x77   :  { %2236 = vmatprep.subr.bf16.mxu0 %v2235_v15  ;;  %v2249_v38 = vpack.c.bf16 %v172_v35, %v170_v34  ;;  %v2251_v39 = vpack.c.bf16 %v177_v37, %v175_v36  ;;  %v174_v40 = vld [vmem:[#allocation8 + $0xc0] sm:$0xff]  ;;  %v176_v41 = vld [vmem:[#allocation8 + $0xd0] sm:$0xff]  ;;  %v179_v42 = vld [vmem:[#allocation8 + $0xe8] sm:$0xff] }
  0x78   :  { %v181_v43 = vld [vmem:[#allocation8 + $0xf8] sm:$0xff]  ;;  %v2253_v44 = vpack.c.bf16 %v176_v41, %v174_v40  ;;  %v178_v46 = vld [vmem:[#allocation8 + $0xe0] sm:$0xff]  ;;  %v180_v47 = vld [vmem:[#allocation8 + $0xf0] sm:$0xff] }
  0x79   :  { %v2255_v45 = vpack.c.bf16 %v181_v43, %v179_v42  ;;  %v2257_v48 = vpack.c.bf16 %v180_v47, %v178_v46  ;;  %v330_v49 = vld [vmem:[#allocation7] sm:$0xff]  ;;  %v331_v50 = vld [vmem:[#allocation7 + $0x8] sm:$0xff]  ;;  %v332_v51 = vld [vmem:[#allocation7 + $0x10] sm:$0xff] }
  0x7a   :  { %2238 = vmatpush1.bf16.msra.mxu0 %v2237_v20  ;;  %v333_v52 = vld [vmem:[#allocation7 + $0x18] sm:$0xff]  ;;  %v334_v53 = vld [vmem:[#allocation7 + $0x20] sm:$0xff]  ;;  %v335_v54 = vld [vmem:[#allocation7 + $0x28] sm:$0xff] }
  0x7b   :  { %2240 = vmatprep.subr.bf16.mxu0 %v2239_v21  ;;  %v336_v55 = vld [vmem:[#allocation7 + $0x30] sm:$0xff]  ;;  %v337_v56 = vld [vmem:[#allocation7 + $0x38] sm:$0xff]  ;;  %v338_v57 = vld [vmem:[#allocation7 + $0x40] sm:$0xff] }
  0x7c   :  { %v339_v58 = vld [vmem:[#allocation7 + $0x48] sm:$0xff]  ;;  %v340_v59 = vld [vmem:[#allocation7 + $0x50] sm:$0xff]  ;;  %v341_v60 = vld [vmem:[#allocation7 + $0x58] sm:$0xff] }
  0x7d   :  { %v342_v61 = vld [vmem:[#allocation7 + $0x60] sm:$0xff]  ;;  %v343_v62 = vld [vmem:[#allocation7 + $0x68] sm:$0xff]  ;;  %v344_v63 = vld [vmem:[#allocation7 + $0x70] sm:$0xff] }
  0x7e   :  { %2242 = vmatpush1.bf16.msra.mxu0 %v2241_v26  ;;  %v345_v1 = vld [vmem:[#allocation7 + $0x78] sm:$0xff]  ;;  %v118_v2 = vld [vmem:[#allocation2] sm:$0xff]  ;;  %v185_v11 = vld [vmem:[#allocation10 + $0x8] sm:$0xff] }
  0x7f   :  { %2244 = vmatprep.subr.bf16.mxu0 %v2243_v27  ;;  %2091 = vmatprep.mubr.f32.mxu1 %v118_v2  ;;  %v182_v6 = vld [vmem:[%s3604_s4] sm:$0x3]  ;;  %v187_v16 = vld [vmem:[#allocation10 + $0x18] sm:$0xff]  ;;  %v194_v18 = vld [vmem:[#allocation10 + $0x50] sm:$0xff] }
  0x80   :  { %v3125_v9 = vrot.slane %v182_v6, %v3116_v5  ;;  %v188_v12 = vld [vmem:[#allocation10 + $0x20] sm:$0xff]  ;;  %v3128_v14 = vrot.slane %v182_v6, %v3122_v7  ;;  %v191_v17 = vld [vmem:[#allocation10 + $0x38] sm:$0xff]  ;;  %v190_v21 = vld [vmem:[#allocation10 + $0x30] sm:$0xff] }
  0x81   :  { %v184_v13 = vld [vmem:[#allocation10] sm:$0xff]  ;;  %v2323_v15 = vpack.c.bf16 %v188_v12, %v185_v11  ;;  %v2327_v20 = vpack.c.bf16 %v194_v18, %v191_v17  ;;  %v193_v22 = vld [vmem:[#allocation10 + $0x48] sm:$0xff]  ;;  %v199_v34 = vld [vmem:[#allocation10 + $0x78] sm:$0xff] }
  0x82   :  { %2246 = vmatpush1.bf16.msra.mxu0 %v2245_v32  ;;  %v2325_v19 = vpack.c.bf16 %v187_v16, %v184_v13  ;;  %v197_v23 = vld [vmem:[#allocation10 + $0x68] sm:$0xff]  ;;  %v200_v25 = vld [vmem:[#allocation10 + $0x80] sm:$0xff]  ;;  %v2329_v29 = vpack.c.bf16 %v193_v22, %v190_v21  ;;  %v203_v36 = vld [vmem:[#allocation10 + $0x98] sm:$0xff] }
  0x83   :  { %2248 = vmatprep.subr.bf16.mxu0 %v2247_v33  ;;  %v2331_v32 = vpack.c.bf16 %v200_v25, %v197_v23  ;;  %v196_v33 = vld [vmem:[#allocation10 + $0x60] sm:$0xff]  ;;  %v206_v37 = vld [vmem:[#allocation10 + $0xb0] sm:$0xff]  ;;  %v217_v3 = vld [vmem:[#allocation10 + $0x108] sm:$0xff] }
  0x84   :  { %v2333_v41 = vpack.c.bf16 %v199_v34, %v196_v33  ;;  %v2335_v42 = vpack.c.bf16 %v206_v37, %v203_v36  ;;  %v202_v43 = vld [vmem:[#allocation10 + $0x90] sm:$0xff]  ;;  %v212_v46 = vld [vmem:[#allocation10 + $0xe0] sm:$0xff]  ;;  %v221_v6 = vld [vmem:[#allocation10 + $0x128] sm:$0xff] }
  0x85   :  { %v214_v2 = vld [vmem:[#allocation10 + $0xf0] sm:$0xff] }
  0x86   :  { %2250 = vmatpush1.bf16.msra.mxu0 %v2249_v38 }
  0x87   :  { %2252 = vmatprep.subr.bf16.mxu0 %v2251_v39 }
  0x8a   :  { %2254 = vmatpush1.bf16.msra.mxu0 %v2253_v44  ;;  %v205_v44 = vld [vmem:[#allocation10 + $0xa8] sm:$0xff] }
  0x8b   :  { %2256 = vmatprep.subr.bf16.mxu0 %v2255_v45  ;;  %v209_v45 = vld [vmem:[#allocation10 + $0xc8] sm:$0xff] }
  0x8e   :  { %2258 = vmatpush1.bf16.msra.mxu0 %v2257_v48 }
  0x8f   :  { %2324 = vmatprep.subr.bf16.mxu0 %v2323_v15  ;;  %v2345_v15 = vpack.c.bf16 %v217_v3, %v214_v2 }
  0x91   :  { %422 = vmatmul.mubr.f32.vlgmr.msra.gmra.mrb[0].mxu0 %v330_v49 }
  0x92   :  { %427 = vmatprep.mubr.f32.mxu0 %v2945_v0  ;;  %2326 = vmatpush1.bf16.msra.mxu0 %v2325_v19  ;;  %v220_v19 = vld [vmem:[#allocation10 + $0x120] sm:$0xff] }
  0x93   :  { %2328 = vmatprep.subr.bf16.mxu0 %v2327_v20  ;;  %v223_v20 = vld [vmem:[#allocation10 + $0x138] sm:$0xff] }
  0x94   :  { %v2349_v25 = vpack.c.bf16 %v223_v20, %v220_v19  ;;  %v120_v19 = vld [vmem:[#allocation2 + $0x10] sm:$0xff]  ;;  %v121_v20 = vld [vmem:[#allocation2 + $0x18] sm:$0xff] }
  0x95   :  { %428 = vmatmul.mubr.f32.gmra.mrb[2].mxu0 %v331_v50 }
  0x96   :  { %433 = vmatprep.mubr.f32.mxu0 %v2945_v0  ;;  %2330 = vmatpush1.bf16.msra.mxu0 %v2329_v29 }
  0x97   :  { %2332 = vmatprep.subr.bf16.mxu0 %v2331_v32 }
  0x99   :  { %434 = vmatmul.mubr.f32.gmra.mrb[4].mxu0 %v332_v51  ;;  %v2337_v51 = vpack.c.bf16 %v205_v44, %v202_v43 }
  0x9a   :  { %439 = vmatprep.mubr.f32.mxu0 %v2945_v0  ;;  %2334 = vmatpush1.bf16.msra.mxu0 %v2333_v41 }
  0x9b   :  { %2336 = vmatprep.subr.bf16.mxu0 %v2335_v42 }
  0x9d   :  { %440 = vmatmul.mubr.f32.gmra.mrb[6].mxu0 %v333_v52 }
  0x9e   :  { %445 = vmatprep.mubr.f32.mxu0 %v2945_v0  ;;  %2338 = vmatpush1.bf16.msra.mxu0 %v2337_v51 }
  0xa1   :  { %446 = vmatmul.mubr.f32.gmra.mrb[8].mxu0 %v334_v53 }
  0xa2   :  { %451 = vmatprep.mubr.f32.mxu0 %v2945_v0 }
  0xa5   :  { %452 = vmatmul.mubr.f32.gmra.mrb[10].mxu0 %v335_v54  ;;  %v2339_v54 = vpack.c.bf16 %v212_v46, %v209_v45 }
  0xa6   :  { %457 = vmatprep.mubr.f32.mxu0 %v2945_v0 }
  0xa7   :  { %2340 = vmatprep.subr.bf16.mxu0 %v2339_v54 }
  0xa9   :  { %458 = vmatmul.mubr.f32.gmra.mrb[12].mxu0 %v336_v55  ;;  %v208_v55 = vld [vmem:[#allocation10 + $0xc0] sm:$0xff] }
  0xaa   :  { %463 = vmatprep.mubr.f32.mxu0 %v2945_v0 }
  0xad   :  { %464 = vmatmul.mubr.f32.gmra.mrb[14].mxu0 %v337_v56  ;;  %v211_v56 = vld [vmem:[#allocation10 + $0xd8] sm:$0xff] }
  0xae   :  { %469 = vmatprep.mubr.f32.mxu0 %v2945_v0 }
  0xb1   :  { %470 = vmatmul.mubr.f32.gmra.mrb[16].mxu0 %v338_v57 }
  0xb2   :  { %475 = vmatprep.mubr.f32.mxu0 %v2945_v0 }
  0xb5   :  { %476 = vmatmul.mubr.f32.gmra.mrb[18].mxu0 %v339_v58  ;;  %v215_v58 = vld [vmem:[#allocation10 + $0xf8] sm:$0xff] }
  0xb6   :  { %481 = vmatprep.mubr.f32.mxu0 %v2945_v0 }
  0xb9   :  { %482 = vmatmul.mubr.f32.gmra.mrb[20].mxu0 %v340_v59  ;;  %v218_v59 = vld [vmem:[#allocation10 + $0x110] sm:$0xff] }
  0xba   :  { %487 = vmatprep.mubr.f32.mxu0 %v2945_v0 }
  0xbd   :  { %488 = vmatmul.mubr.f32.gmra.mrb[22].mxu0 %v341_v60 }
  0xbe   :  { %493 = vmatprep.mubr.f32.mxu0 %v2945_v0 }
  0xc1   :  { %494 = vmatmul.mubr.f32.gmra.mrb[24].mxu0 %v342_v61 }
  0xc2   :  { %499 = vmatprep.mubr.f32.mxu0 %v2945_v0 }
  0xc5   :  { %500 = vmatmul.mubr.f32.gmra.mrb[26].mxu0 %v343_v62 }
  0xc6   :  { %505 = vmatprep.mubr.f32.mxu0 %v2945_v0 }
  0xc9   :  { %506 = vmatmul.mubr.f32.gmra.mrb[28].mxu0 %v344_v63  ;;  %v2341_v63 = vpack.c.bf16 %v211_v56, %v208_v55 }
  0xca   :  { %511 = vmatprep.mubr.f32.mxu0 %v2945_v0 }
  0xcb   :  { %2342 = vmatpush1.bf16.msra.mxu0 %v2341_v63 }
  0xcd   :  { %512 = vmatmul.mubr.f32.gmra.mrb[30].mxu0 %v345_v1  ;;  %v2343_v1 = vpack.c.bf16 %v218_v59, %v215_v58 }
  0xcf   :  { %2344 = vmatprep.subr.bf16.mxu0 %v2343_v1 }
  0xd0   :  { %2346 = vmatpush1.bf16.msra.mxu0 %v2345_v15 }
 0x164   :  { %v423_v8 = vpop.f32.mrb[0].mxu0 }
 0x165   :  { %v425_v10 = vpop.f32.mrb[1].mxu0  ;;  %v424_v26 = vadd.f32 %v423_v8, %v3125_v9  ;;  %v224_v8 = vld [vmem:[#allocation10 + $0x140] sm:$0xff] }
 0x166   :  { %v426_v30 = vadd.f32 %v425_v10, %v3128_v14  ;;  %v2347_v18 = vpack.c.bf16 %v224_v8, %v221_v6 }
 0x168   :  { %v429_v24 = vpop.f32.mrb[2].mxu0  ;;  %2348 = vmatprep.subr.bf16.mxu0 %v2347_v18  ;;  %v119_v18 = vld [vmem:[#allocation2 + $0x8] sm:$0xff] }
 0x169   :  { %v430_v27 = vadd.f32 %v429_v24, %v3125_v9  ;;  %v431_v28 = vpop.f32.mrb[3].mxu0  ;;  %2350 = vmatpush1.bf16.msra.mxu0 %v2349_v25  ;;  %v129_v25 = vld [vmem:[#allocation2 + $0x58] sm:$0xff] }
 0x16a   :  { %v432_v31 = vadd.f32 %v431_v28, %v3128_v14 }
 0x16b   :  { %v2259_v35 = vpack.c.bf16 %v430_v27, %v424_v26 }
 0x16c   :  { %v3134_v38 = vpack.c.bf16 %v432_v31, %v426_v30  ;;  %v435_v39 = vpop.f32.mrb[4].mxu0 }
 0x16d   :  { %v437_v40 = vpop.f32.mrb[5].mxu0  ;;  %2260 = vmatprep.subr.bf16.mxu1 %v2259_v35  ;;  %v436_v48 = vadd.f32 %v435_v39, %v3125_v9 }
 0x16e   :  { %2262 = vmatpush3.bf16.msra.mxu1 %v2259_v35  ;;  %v438_v52 = vadd.f32 %v437_v40, %v3128_v14 }
 0x170   :  { %v441_v47 = vpop.f32.mrb[6].mxu0 }
 0x171   :  { %v442_v49 = vadd.f32 %v441_v47, %v3125_v9  ;;  %v443_v50 = vpop.f32.mrb[7].mxu0 }
 0x172   :  { %v444_v53 = vadd.f32 %v443_v50, %v3128_v14 }
 0x173   :  { %v2263_v57 = vpack.c.bf16 %v442_v49, %v436_v48 }
 0x174   :  { %v3140_v60 = vpack.c.bf16 %v444_v53, %v438_v52  ;;  %v447_v61 = vpop.f32.mrb[8].mxu0 }
 0x175   :  { %v449_v62 = vpop.f32.mrb[9].mxu0  ;;  %2264 = vmatprep.subr.bf16.mxu1 %v2263_v57  ;;  %v448_v11 = vadd.f32 %v447_v61, %v3125_v9 }
 0x176   :  { %2266 = vmatpush3.bf16.msra.mxu1 %v2263_v57  ;;  %v450_v16 = vadd.f32 %v449_v62, %v3128_v14 }
 0x178   :  { %v453_v10 = vpop.f32.mrb[10].mxu0 }
 0x179   :  { %v454_v12 = vadd.f32 %v453_v10, %v3125_v9  ;;  %v455_v13 = vpop.f32.mrb[11].mxu0 }
 0x17a   :  { %v456_v17 = vadd.f32 %v455_v13, %v3128_v14 }
 0x17b   :  { %v2267_v21 = vpack.c.bf16 %v454_v12, %v448_v11 }
 0x17c   :  { %v3146_v22 = vpack.c.bf16 %v456_v17, %v450_v16  ;;  %v459_v23 = vpop.f32.mrb[12].mxu0 }
 0x17d   :  { %v461_v24 = vpop.f32.mrb[13].mxu0  ;;  %2268 = vmatprep.subr.bf16.mxu1 %v2267_v21  ;;  %v460_v27 = vadd.f32 %v459_v23, %v3125_v9  ;;  %v125_v23 = vld [vmem:[#allocation2 + $0x38] sm:$0xff] }
 0x17e   :  { %2270 = vmatpush3.bf16.msra.mxu1 %v2267_v21  ;;  %v462_v30 = vadd.f32 %v461_v24, %v3128_v14  ;;  %v124_v21 = vld [vmem:[#allocation2 + $0x30] sm:$0xff]  ;;  %v127_v24 = vld [vmem:[#allocation2 + $0x48] sm:$0xff] }
 0x180   :  { %v465_v26 = vpop.f32.mrb[14].mxu0 }
 0x181   :  { %v466_v28 = vadd.f32 %v465_v26, %v3125_v9  ;;  %v467_v29 = vpop.f32.mrb[15].mxu0  ;;  %v131_v26 = vld [vmem:[#allocation2 + $0x68] sm:$0xff] }
 0x182   :  { %v468_v31 = vadd.f32 %v467_v29, %v3128_v14  ;;  %v134_v29 = vld [vmem:[#allocation5] sm:$0xff] }
 0x183   :  { %v2271_v32 = vpack.c.bf16 %v466_v28, %v460_v27  ;;  %v132_v27 = vld [vmem:[#allocation2 + $0x70] sm:$0xff]  ;;  %v133_v28 = vld [vmem:[#allocation2 + $0x78] sm:$0xff] }
 0x184   :  { %v3152_v33 = vpack.c.bf16 %v468_v31, %v462_v30  ;;  %v471_v34 = vpop.f32.mrb[16].mxu0  ;;  %v135_v30 = vld [vmem:[#allocation5 + $0x8] sm:$0xff]  ;;  %v136_v31 = vld [vmem:[#allocation5 + $0x10] sm:$0xff] }
 0x185   :  { %v473_v35 = vpop.f32.mrb[17].mxu0  ;;  %2272 = vmatprep.subr.bf16.mxu1 %v2271_v32  ;;  %v472_v37 = vadd.f32 %v471_v34, %v3125_v9  ;;  %v139_v34 = vld [vmem:[#allocation5 + $0x28] sm:$0xff] }
 0x186   :  { %2274 = vmatpush3.bf16.msra.mxu1 %v2271_v32  ;;  %v474_v41 = vadd.f32 %v473_v35, %v3128_v14  ;;  %v137_v32 = vld [vmem:[#allocation5 + $0x18] sm:$0xff]  ;;  %v140_v35 = vld [vmem:[#allocation5 + $0x30] sm:$0xff] }
 0x188   :  { %v477_v36 = vpop.f32.mrb[18].mxu0 }
 0x189   :  { %v478_v39 = vadd.f32 %v477_v36, %v3125_v9  ;;  %v479_v40 = vpop.f32.mrb[19].mxu0  ;;  %v141_v36 = vld [vmem:[#allocation5 + $0x38] sm:$0xff] }
 0x18a   :  { %v480_v42 = vadd.f32 %v479_v40, %v3128_v14  ;;  %v144_v40 = vld [vmem:[#allocation5 + $0x50] sm:$0xff] }
 0x18b   :  { %v2275_v43 = vpack.c.bf16 %v478_v39, %v472_v37  ;;  %v142_v37 = vld [vmem:[#allocation5 + $0x40] sm:$0xff]  ;;  %v143_v39 = vld [vmem:[#allocation5 + $0x48] sm:$0xff] }
 0x18c   :  { %v3158_v44 = vpack.c.bf16 %v480_v42, %v474_v41  ;;  %v483_v45 = vpop.f32.mrb[20].mxu0  ;;  %v145_v41 = vld [vmem:[#allocation5 + $0x58] sm:$0xff]  ;;  %v146_v42 = vld [vmem:[#allocation5 + $0x60] sm:$0xff] }
 0x18d   :  { %v485_v46 = vpop.f32.mrb[21].mxu0  ;;  %2276 = vmatprep.subr.bf16.mxu1 %v2275_v43  ;;  %v484_v48 = vadd.f32 %v483_v45, %v3125_v9  ;;  %v149_v45 = vld [vmem:[#allocation5 + $0x78] sm:$0xff] }
 0x18e   :  { %2278 = vmatpush3.bf16.msra.mxu1 %v2275_v43  ;;  %v486_v51 = vadd.f32 %v485_v46, %v3128_v14  ;;  %v147_v43 = vld [vmem:[#allocation5 + $0x68] sm:$0xff]  ;;  %v227_v46 = vld [vmem:[#allocation10 + $0x158] sm:$0xff] }
 0x190   :  { %v489_v47 = vpop.f32.mrb[22].mxu0 }
 0x191   :  { %v490_v49 = vadd.f32 %v489_v47, %v3125_v9  ;;  %v491_v50 = vpop.f32.mrb[23].mxu0  ;;  %v230_v47 = vld [vmem:[#allocation10 + $0x170] sm:$0xff] }
 0x192   :  { %v492_v52 = vadd.f32 %v491_v50, %v3128_v14  ;;  %v229_v50 = vld [vmem:[#allocation10 + $0x168] sm:$0xff] }
 0x193   :  { %v2279_v53 = vpack.c.bf16 %v490_v49, %v484_v48  ;;  %v2351_v48 = vpack.c.bf16 %v230_v47, %v227_v46  ;;  %v226_v49 = vld [vmem:[#allocation10 + $0x150] sm:$0xff]  ;;  %v259_v46 = vld [vmem:[#allocation10 + $0x258] sm:$0xff] }
 0x194   :  { %v2311_v54 = vpack.c.bf16 %v492_v52, %v486_v51  ;;  %v495_v55 = vpop.f32.mrb[24].mxu0  ;;  %v2353_v51 = vpack.c.bf16 %v229_v50, %v226_v49  ;;  %v233_v52 = vld [vmem:[#allocation10 + $0x188] sm:$0xff]  ;;  %v210_v49 = vld [vmem:[#allocation10 + $0xd0] sm:$0xff] }
 0x195   :  { %v497_v56 = vpop.f32.mrb[25].mxu0  ;;  %2280 = vmatprep.subr.bf16.mxu1 %v2279_v53  ;;  %v496_v58 = vadd.f32 %v495_v55, %v3125_v9  ;;  %2352 = vmatprep.subr.bf16.mxu0 %v2351_v48  ;;  %v213_v50 = vld [vmem:[#allocation10 + $0xe8] sm:$0xff] }
 0x196   :  { %2282 = vmatpush3.bf16.msra.mxu1 %v2279_v53  ;;  %v498_v62 = vadd.f32 %v497_v56, %v3128_v14  ;;  %2354 = vmatpush1.bf16.msra.mxu0 %v2353_v51  ;;  %v236_v53 = vld [vmem:[#allocation10 + $0x1a0] sm:$0xff]  ;;  %v237_v56 = vld [vmem:[#allocation10 + $0x1a8] sm:$0xff]  ;;  %v2405_v51 = vpack.c.bf16 %v213_v50, %v210_v49 }
 0x197   :  { %v2355_v55 = vpack.c.bf16 %v236_v53, %v233_v52  ;;  %v263_v52 = vld [vmem:[#allocation10 + $0x278] sm:$0xff]  ;;  %v266_v53 = vld [vmem:[#allocation10 + $0x290] sm:$0xff] }
 0x198   :  { %v501_v57 = vpop.f32.mrb[26].mxu0 }
 0x199   :  { %v502_v59 = vadd.f32 %v501_v57, %v3125_v9  ;;  %v503_v61 = vpop.f32.mrb[27].mxu0  ;;  %v232_v57 = vld [vmem:[#allocation10 + $0x180] sm:$0xff]  ;;  %2356 = vmatprep.subr.bf16.mxu0 %v2355_v55  ;;  %v2375_v55 = vpack.c.bf16 %v266_v53, %v263_v52 }
 0x19a   :  { %v504_v63 = vadd.f32 %v503_v61, %v3128_v14 }
 0x19b   :  { %v2283_v1 = vpack.c.bf16 %v502_v59, %v496_v58  ;;  %v235_v58 = vld [vmem:[#allocation10 + $0x198] sm:$0xff] }
 0x19c   :  { %v2315_v2 = vpack.c.bf16 %v504_v63, %v498_v62  ;;  %v507_v3 = vpop.f32.mrb[28].mxu0  ;;  %v2357_v61 = vpack.c.bf16 %v235_v58, %v232_v57  ;;  %v186_v62 = vld [vmem:[#allocation10 + $0x10] sm:$0xff]  ;;  %v189_v63 = vld [vmem:[#allocation10 + $0x28] sm:$0xff] }
 0x19d   :  { %v509_v6 = vpop.f32.mrb[29].mxu0  ;;  %2284 = vmatprep.subr.bf16.mxu1 %v2283_v1  ;;  %v508_v10 = vadd.f32 %v507_v3, %v3125_v9  ;;  %v242_v3 = vld [vmem:[#allocation10 + $0x1d0] sm:$0xff]  ;;  %v265_v58 = vld [vmem:[#allocation10 + $0x288] sm:$0xff] }
 0x19e   :  { %2286 = vmatpush3.bf16.msra.mxu1 %v2283_v1  ;;  %v510_v13 = vadd.f32 %v509_v6, %v3128_v14  ;;  %v2389_v1 = vpack.c.bf16 %v189_v63, %v186_v62  ;;  %2358 = vmatpush1.bf16.msra.mxu0 %v2357_v61  ;;  %v240_v6 = vld [vmem:[#allocation10 + $0x1c0] sm:$0xff]  ;;  %v262_v57 = vld [vmem:[#allocation10 + $0x270] sm:$0xff]  ;;  %v219_v63 = vld [vmem:[#allocation10 + $0x118] sm:$0xff] }
 0x19f   :  { %v2377_v61 = vpack.c.bf16 %v265_v58, %v262_v57  ;;  %v216_v62 = vld [vmem:[#allocation10 + $0x100] sm:$0xff]  ;;  %v291_v58 = vld [vmem:[#allocation11 + $0x50] sm:$0xff] }
 0x1a0   :  { %v513_v8 = vpop.f32.mrb[30].mxu0 }
 0x1a1   :  { %v514_v11 = vadd.f32 %v513_v8, %v3125_v9  ;;  %v515_v12 = vpop.f32.mrb[31].mxu0  ;;  %v122_v9 = vld [vmem:[#allocation2 + $0x20] sm:$0xff] }
 0x1a2   :  { %v516_v15 = vadd.f32 %v515_v12, %v3128_v14  ;;  %v123_v14 = vld [vmem:[#allocation2 + $0x28] sm:$0xff] }
 0x1a3   :  { %v2287_v16 = vpack.c.bf16 %v514_v11, %v508_v10  ;;  %v243_v10 = vld [vmem:[#allocation10 + $0x1d8] sm:$0xff]  ;;  %v238_v11 = vld [vmem:[#allocation10 + $0x1b0] sm:$0xff]  ;;  %v241_v12 = vld [vmem:[#allocation10 + $0x1c8] sm:$0xff] }
 0x1a4   :  { %v2319_v17 = vpack.c.bf16 %v516_v15, %v510_v13  ;;  %v2391_v13 = vpack.c.bf16 %v243_v10, %v240_v6  ;;  %v2361_v15 = vpack.c.bf16 %v241_v12, %v238_v11  ;;  %v270_v6 = vld [vmem:[#allocation10 + $0x2b0] sm:$0xff]  ;;  %v273_v10 = vld [vmem:[#allocation10 + $0x2c8] sm:$0xff]  ;;  %v268_v11 = vld [vmem:[#allocation10 + $0x2a0] sm:$0xff] }
 0x1a5   :  { %2288 = vmatprep.subr.bf16.mxu1 %v2287_v16  ;;  %v271_v12 = vld [vmem:[#allocation10 + $0x2b8] sm:$0xff] }
 0x1a6   :  { %2290 = vmatpush3.bf16.msra.mxu1 %v2287_v16  ;;  %v192_v16 = vld [vmem:[#allocation10 + $0x40] sm:$0xff] }
 0x1a7   :  { %2292 = vmatprep.subr.bf16.mxu1 %v3134_v38 }
 0x1a9   :  { %2092 = vmatmul.mubr.f32.vlgmr.msra.gmra.mrb[0].mxu1 %v119_v18 }
 0x1aa   :  { %2294 = vmatpush3.bf16.msra.mxu1 %v3134_v38  ;;  %2094 = vmatprep.mubr.f32.mxu1 %v120_v19  ;;  %v126_v38 = vld [vmem:[#allocation2 + $0x40] sm:$0xff]  ;;  %v245_v19 = vld [vmem:[#allocation10 + $0x1e8] sm:$0xff] }
 0x1ab   :  { %2296 = vmatprep.subr.bf16.mxu1 %v3140_v60 }
 0x1ad   :  { %2095 = vmatmul.mubr.f32.gmra.mrb[2].mxu1 %v121_v20  ;;  %v248_v20 = vld [vmem:[#allocation10 + $0x200] sm:$0xff] }
 0x1ae   :  { %2298 = vmatpush3.bf16.msra.mxu1 %v3140_v60  ;;  %2097 = vmatprep.mubr.f32.mxu1 %v122_v9  ;;  %v128_v60 = vld [vmem:[#allocation2 + $0x50] sm:$0xff] }
 0x1af   :  { %2300 = vmatprep.subr.bf16.mxu1 %v3146_v22  ;;  %v246_v9 = vld [vmem:[#allocation10 + $0x1f0] sm:$0xff] }
 0x1b1   :  { %2098 = vmatmul.mubr.f32.gmra.mrb[4].mxu1 %v123_v14  ;;  %v2363_v14 = vpack.c.bf16 %v248_v20, %v245_v19  ;;  %v275_v19 = vld [vmem:[#allocation10 + $0x2d8] sm:$0xff]  ;;  %v278_v20 = vld [vmem:[#allocation10 + $0x2f0] sm:$0xff] }
 0x1b2   :  { %2302 = vmatpush3.bf16.msra.mxu1 %v3146_v22  ;;  %2100 = vmatprep.mubr.f32.mxu1 %v124_v21  ;;  %v130_v22 = vld [vmem:[#allocation2 + $0x60] sm:$0xff]  ;;  %v249_v21 = vld [vmem:[#allocation10 + $0x208] sm:$0xff] }
 0x1b3   :  { %2304 = vmatprep.subr.bf16.mxu1 %v3152_v33 }
 0x1b5   :  { %2101 = vmatmul.mubr.f32.gmra.mrb[6].mxu1 %v125_v23  ;;  %v244_v23 = vld [vmem:[#allocation10 + $0x1e0] sm:$0xff] }
 0x1b6   :  { %2306 = vmatpush3.bf16.msra.mxu1 %v3152_v33  ;;  %2103 = vmatprep.mubr.f32.mxu1 %v126_v38  ;;  %v138_v33 = vld [vmem:[#allocation5 + $0x20] sm:$0xff]  ;;  %v247_v38 = vld [vmem:[#allocation10 + $0x1f8] sm:$0xff] }
 0x1b7   :  { %2308 = vmatprep.subr.bf16.mxu1 %v3158_v44 }
 0x1b9   :  { %2104 = vmatmul.mubr.f32.gmra.mrb[8].mxu1 %v127_v24  ;;  %v2395_v24 = vpack.c.bf16 %v249_v21, %v246_v9  ;;  %v276_v9 = vld [vmem:[#allocation10 + $0x2e0] sm:$0xff]  ;;  %v279_v21 = vld [vmem:[#allocation10 + $0x2f8] sm:$0xff] }
 0x1ba   :  { %2310 = vmatpush3.bf16.msra.mxu1 %v3158_v44  ;;  %2106 = vmatprep.mubr.f32.mxu1 %v128_v60  ;;  %v148_v44 = vld [vmem:[#allocation5 + $0x70] sm:$0xff]  ;;  %v2365_v60 = vpack.c.bf16 %v247_v38, %v244_v23  ;;  %v277_v38 = vld [vmem:[#allocation10 + $0x2e8] sm:$0xff] }
 0x1bb   :  { %2312 = vmatprep.subr.bf16.mxu1 %v2311_v54  ;;  %v274_v23 = vld [vmem:[#allocation10 + $0x2d0] sm:$0xff] }
 0x1bd   :  { %2107 = vmatmul.mubr.f32.gmra.mrb[10].mxu1 %v129_v25  ;;  %v198_v25 = vld [vmem:[#allocation10 + $0x70] sm:$0xff] }
 0x1be   :  { %2314 = vmatpush3.bf16.msra.mxu1 %v2311_v54  ;;  %2109 = vmatprep.mubr.f32.mxu1 %v130_v22  ;;  %v234_v54 = vld [vmem:[#allocation10 + $0x190] sm:$0xff]  ;;  %v201_v22 = vld [vmem:[#allocation10 + $0x88] sm:$0xff] }
 0x1bf   :  { %2316 = vmatprep.subr.bf16.mxu1 %v2315_v2  ;;  %v2387_v59 = vpack.c.bf16 %v237_v56, %v234_v54  ;;  %v264_v54 = vld [vmem:[#allocation10 + $0x280] sm:$0xff]  ;;  %v267_v56 = vld [vmem:[#allocation10 + $0x298] sm:$0xff] }
 0x1c1   :  { %2110 = vmatmul.mubr.f32.gmra.mrb[12].mxu1 %v131_v26  ;;  %v2397_v26 = vpack.c.bf16 %v201_v22, %v198_v25  ;;  %v228_v25 = vld [vmem:[#allocation10 + $0x160] sm:$0xff]  ;;  %v231_v22 = vld [vmem:[#allocation10 + $0x178] sm:$0xff] }
 0x1c2   :  { %2318 = vmatpush3.bf16.msra.mxu1 %v2315_v2  ;;  %2112 = vmatprep.mubr.f32.mxu1 %v132_v27  ;;  %v239_v2 = vld [vmem:[#allocation10 + $0x1b8] sm:$0xff] }
 0x1c3   :  { %2320 = vmatprep.subr.bf16.mxu1 %v2319_v17  ;;  %v2359_v8 = vpack.c.bf16 %v242_v3, %v239_v2  ;;  %v251_v27 = vld [vmem:[#allocation10 + $0x218] sm:$0xff]  ;;  %v269_v2 = vld [vmem:[#allocation10 + $0x2a8] sm:$0xff]  ;;  %v272_v3 = vld [vmem:[#allocation10 + $0x2c0] sm:$0xff] }
 0x1c5   :  { %2113 = vmatmul.mubr.f32.gmra.mrb[14].mxu1 %v133_v28  ;;  %2360 = vmatprep.subr.bf16.mxu0 %v2359_v8  ;;  %v254_v28 = vld [vmem:[#allocation10 + $0x230] sm:$0xff]  ;;  %v2379_v8 = vpack.c.bf16 %v272_v3, %v269_v2 }
 0x1c6   :  { %2322 = vmatpush3.bf16.msra.mxu1 %v2319_v17  ;;  %2147 = vmatprep.mubr.f32.mxu1 %v134_v29  ;;  %v195_v17 = vld [vmem:[#allocation10 + $0x58] sm:$0xff]  ;;  %v252_v29 = vld [vmem:[#allocation10 + $0x220] sm:$0xff] }
 0x1c7   :  { %2388 = vmatprep.subr.bf16.mxu1 %v2387_v59  ;;  %v2393_v18 = vpack.c.bf16 %v195_v17, %v192_v16  ;;  %2362 = vmatpush1.bf16.msra.mxu0 %v2361_v15  ;;  %v2407_v59 = vpack.c.bf16 %v267_v56, %v264_v54  ;;  %v2381_v15 = vpack.c.bf16 %v271_v12, %v268_v11  ;;  %v222_v16 = vld [vmem:[#allocation10 + $0x130] sm:$0xff]  ;;  %v225_v17 = vld [vmem:[#allocation10 + $0x148] sm:$0xff]  ;;  %v281_v54 = vld [vmem:[#allocation11] sm:$0xff] }
 0x1c8   :  { %2364 = vmatprep.subr.bf16.mxu0 %v2363_v14  ;;  %v2383_v14 = vpack.c.bf16 %v278_v20, %v275_v19  ;;  %v288_v56 = vld [vmem:[#allocation11 + $0x38] sm:$0xff]  ;;  %v294_v11 = vld [vmem:[#allocation11 + $0x68] sm:$0xff] }
 0x1c9   :  { %2148 = vmatmul.mubr.f32.vlgmr.msra.gmra.mrb[16].mxu1 %v135_v30  ;;  %v2367_v30 = vpack.c.bf16 %v254_v28, %v251_v27  ;;  %v282_v27 = vld [vmem:[#allocation11 + $0x8] sm:$0xff]  ;;  %v285_v28 = vld [vmem:[#allocation11 + $0x20] sm:$0xff] }
 0x1ca   :  { %2150 = vmatprep.mubr.f32.mxu1 %v136_v31  ;;  %2390 = vmatpush3.bf16.msra.mxu1 %v2389_v1  ;;  %v255_v31 = vld [vmem:[#allocation10 + $0x238] sm:$0xff]  ;;  %v2409_v1 = vpack.c.bf16 %v219_v63, %v216_v62 }
 0x1cb   :  { %2392 = vmatprep.subr.bf16.mxu1 %v2391_v13  ;;  %2366 = vmatpush1.bf16.msra.mxu0 %v2365_v60  ;;  %v2411_v13 = vpack.c.bf16 %v273_v10, %v270_v6  ;;  %v2385_v60 = vpack.c.bf16 %v277_v38, %v274_v23  ;;  %v2423_v6 = vpack.c.bf16 %v291_v58, %v288_v56  ;;  %v290_v10 = vld [vmem:[#allocation11 + $0x48] sm:$0xff]  ;;  %v296_v23 = vld [vmem:[#allocation11 + $0x78] sm:$0xff] }
 0x1cc   :  { %2368 = vmatprep.subr.bf16.mxu0 %v2367_v30  ;;  %v283_v30 = vld [vmem:[#allocation11 + $0x10] sm:$0xff]  ;;  %v300_v38 = vld [vmem:[#allocation11 + $0x98] sm:$0xff] }
 0x1cd   :  { %2151 = vmatmul.mubr.f32.gmra.mrb[18].mxu1 %v137_v32  ;;  %v250_v32 = vld [vmem:[#allocation10 + $0x210] sm:$0xff] }
 0x1ce   :  { %2153 = vmatprep.mubr.f32.mxu1 %v138_v33  ;;  %2394 = vmatpush3.bf16.msra.mxu1 %v2393_v18  ;;  %v253_v33 = vld [vmem:[#allocation10 + $0x228] sm:$0xff]  ;;  %v2413_v18 = vpack.c.bf16 %v225_v17, %v222_v16  ;;  %v295_v16 = vld [vmem:[#allocation11 + $0x70] sm:$0xff] }
 0x1cf   :  { %2396 = vmatprep.subr.bf16.mxu1 %v2395_v24  ;;  %v2415_v24 = vpack.c.bf16 %v279_v21, %v276_v9  ;;  %v298_v17 = vld [vmem:[#allocation11 + $0x88] sm:$0xff]  ;;  %v293_v21 = vld [vmem:[#allocation11 + $0x60] sm:$0xff] }
 0x1d1   :  { %2154 = vmatmul.mubr.f32.gmra.mrb[20].mxu1 %v139_v34  ;;  %v2399_v34 = vpack.c.bf16 %v255_v31, %v252_v29  ;;  %v2419_v29 = vpack.c.bf16 %v285_v28, %v282_v27  ;;  %v286_v31 = vld [vmem:[#allocation11 + $0x28] sm:$0xff]  ;;  %v2429_v28 = vpack.c.bf16 %v296_v23, %v293_v21 }
 0x1d2   :  { %2156 = vmatprep.mubr.f32.mxu1 %v140_v35  ;;  %2398 = vmatpush3.bf16.msra.mxu1 %v2397_v26  ;;  %v2369_v35 = vpack.c.bf16 %v253_v33, %v250_v32  ;;  %v2417_v26 = vpack.c.bf16 %v231_v22, %v228_v25  ;;  %v2451_v32 = vpack.c.bf16 %v286_v31, %v283_v30  ;;  %v303_v25 = vld [vmem:[#allocation11 + $0xb0] sm:$0xff]  ;;  %v301_v22 = vld [vmem:[#allocation11 + $0xa0] sm:$0xff]  ;;  %v322_v21 = vld [vmem:[#allocation11 + $0x148] sm:$0xff] }
 0x1d3   :  { %2400 = vmatprep.subr.bf16.mxu1 %v2399_v34  ;;  %v2431_v31 = vpack.c.bf16 %v303_v25, %v300_v38  ;;  %v317_v25 = vld [vmem:[#allocation11 + $0x120] sm:$0xff] }
 0x1d4   :  { %2370 = vmatpush1.bf16.msra.mxu0 %v2369_v35 }
 0x1d5   :  { %2157 = vmatmul.mubr.f32.gmra.mrb[22].mxu1 %v141_v36  ;;  %v204_v36 = vld [vmem:[#allocation10 + $0xa0] sm:$0xff] }
 0x1d6   :  { %2159 = vmatprep.mubr.f32.mxu1 %v142_v37  ;;  %v207_v37 = vld [vmem:[#allocation10 + $0xb8] sm:$0xff] }
 0x1d9   :  { %2160 = vmatmul.mubr.f32.gmra.mrb[24].mxu1 %v143_v39  ;;  %v2401_v39 = vpack.c.bf16 %v207_v37, %v204_v36 }
 0x1da   :  { %2162 = vmatprep.mubr.f32.mxu1 %v144_v40  ;;  %v257_v40 = vld [vmem:[#allocation10 + $0x248] sm:$0xff] }
 0x1db   :  { %2402 = vmatpush3.bf16.msra.mxu1 %v2401_v39 }
 0x1dd   :  { %2163 = vmatmul.mubr.f32.gmra.mrb[26].mxu1 %v145_v41  ;;  %v260_v41 = vld [vmem:[#allocation10 + $0x260] sm:$0xff] }
 0x1de   :  { %2165 = vmatprep.mubr.f32.mxu1 %v146_v42  ;;  %v258_v42 = vld [vmem:[#allocation10 + $0x250] sm:$0xff] }
 0x1e1   :  { %2166 = vmatmul.mubr.f32.gmra.mrb[28].mxu1 %v147_v43  ;;  %v2371_v43 = vpack.c.bf16 %v260_v41, %v257_v40 }
 0x1e2   :  { %2168 = vmatprep.mubr.f32.mxu1 %v148_v44  ;;  %v261_v44 = vld [vmem:[#allocation10 + $0x268] sm:$0xff] }
 0x1e3   :  { %v2403_v47 = vpack.c.bf16 %v261_v44, %v258_v42  ;;  %2372 = vmatprep.subr.bf16.mxu0 %v2371_v43 }
 0x1e5   :  { %2169 = vmatmul.mubr.f32.gmra.mrb[30].mxu1 %v149_v45  ;;  %v256_v45 = vld [vmem:[#allocation10 + $0x240] sm:$0xff]  ;;  %2404 = vmatprep.subr.bf16.mxu1 %v2403_v47 }
 0x1e6   :  { %v2373_v48 = vpack.c.bf16 %v259_v46, %v256_v45  ;;  %2406 = vmatpush3.bf16.msra.mxu1 %v2405_v51 }
 0x1e7   :  { %2408 = vmatprep.subr.bf16.mxu1 %v2407_v59  ;;  %v289_v59 = vld [vmem:[#allocation11 + $0x40] sm:$0xff] }
 0x1e8   :  { %2374 = vmatpush1.bf16.msra.mxu0 %v2373_v48  ;;  %v183_v48 = vld [vmem:[%s3605_s5] sm:$0x3] }
 0x1e9   :  { %2376 = vmatprep.subr.bf16.mxu0 %v2375_v55  ;;  %v3214_v51 = vrot.slane %v183_v48, %v3122_v7  ;;  %v3217_v52 = vrot.slane %v183_v48, %v3116_v5  ;;  %v284_v55 = vld [vmem:[#allocation11 + $0x18] sm:$0xff] }
 0x1ea   :  { %2410 = vmatpush3.bf16.msra.mxu1 %v2409_v1  ;;  %v2421_v1 = vpack.c.bf16 %v284_v55, %v281_v54  ;;  %v309_v54 = vld [vmem:[#allocation11 + $0xe0] sm:$0xff]  ;;  %v307_v55 = vld [vmem:[#allocation11 + $0xd0] sm:$0xff] }
 0x1eb   :  { %2412 = vmatprep.subr.bf16.mxu1 %v2411_v13 }
 0x1ec   :  { %2378 = vmatpush1.bf16.msra.mxu0 %v2377_v61  ;;  %v292_v61 = vld [vmem:[#allocation11 + $0x58] sm:$0xff] }
 0x1ed   :  { %2380 = vmatprep.subr.bf16.mxu0 %v2379_v8  ;;  %v287_v8 = vld [vmem:[#allocation11 + $0x30] sm:$0xff]  ;;  %v2455_v12 = vpack.c.bf16 %v292_v61, %v289_v59 }
 0x1ee   :  { %2414 = vmatpush3.bf16.msra.mxu1 %v2413_v18  ;;  %v2425_v20 = vpack.c.bf16 %v290_v10, %v287_v8  ;;  %v313_v8 = vld [vmem:[#allocation11 + $0x100] sm:$0xff]  ;;  %v316_v10 = vld [vmem:[#allocation11 + $0x118] sm:$0xff] }
 0x1ef   :  { %2416 = vmatprep.subr.bf16.mxu1 %v2415_v24  ;;  %v2459_v24 = vpack.c.bf16 %v298_v17, %v295_v16  ;;  %v311_v16 = vld [vmem:[#allocation11 + $0xf0] sm:$0xff]  ;;  %v314_v17 = vld [vmem:[#allocation11 + $0x108] sm:$0xff] }
 0x1f0   :  { %2382 = vmatpush1.bf16.msra.mxu0 %v2381_v15  ;;  %v297_v15 = vld [vmem:[#allocation11 + $0x80] sm:$0xff]  ;;  %v2441_v38 = vpack.c.bf16 %v314_v17, %v311_v16  ;;  %v3336_v17 = vld [vmem:[#allocation7 + $0x68] sm:$0xff] }
 0x1f1   :  { %2384 = vmatprep.subr.bf16.mxu0 %v2383_v14  ;;  %v2427_v14 = vpack.c.bf16 %v297_v15, %v294_v11  ;;  %v3332_v16 = vld [vmem:[#allocation7 + $0x60] sm:$0xff]  ;;  %3619 = vst [vmem:[#allocation21_spill] sm:$0xff] %v3336_v17 }
 0x1f2   :  { %2418 = vmatpush3.bf16.msra.mxu1 %v2417_v26  ;;  %v304_v26 = vld [vmem:[#allocation11 + $0xb8] sm:$0xff]  ;;  %3618 = vst [vmem:[#allocation20_spill] sm:$0xff] %v3332_v16 }
 0x1f3   :  { %2452 = vmatprep.subr.bf16.mxu1 %v2451_v32  ;;  %v2463_v48 = vpack.c.bf16 %v304_v26, %v301_v22  ;;  %v320_v22 = vld [vmem:[#allocation11 + $0x138] sm:$0xff] }
 0x1f4   :  { %2386 = vmatpush1.bf16.msra.mxu0 %v2385_v60  ;;  %v324_v26 = vld [vmem:[#allocation11 + $0x158] sm:$0xff] }
 0x1f5   :  { %2420 = vmatprep.subr.bf16.mxu0 %v2419_v29 }
 0x27c   :  { %v2093_v33 = vpop.f32.mrb[0].mxu1 }
 0x27d   :  { %v584_v34 = vpop.f32.mrb[1].mxu1  ;;  %v821_v19 = vadd.f32 %v2093_v33, %v3217_v52  ;;  %v302_v33 = vld [vmem:[#allocation11 + $0xa8] sm:$0xff] }
 0x27e   :  { %v819_v63 = vadd.f32 %v3217_v52, %v584_v34  ;;  %v306_v34 = vld [vmem:[#allocation11 + $0xc8] sm:$0xff] }
 0x27f   :  { %v2435_v61 = vpack.c.bf16 %v309_v54, %v306_v34  ;;  %v323_v54 = vld [vmem:[#allocation11 + $0x150] sm:$0xff] }
 0x280   :  { %v3182_v35 = vpop.f32.mrb[2].mxu1 }
 0x281   :  { %v3184_v36 = vpop.f32.mrb[3].mxu1 }
 0x282   :  { %v823_v27 = vadd.f32 %v3217_v52, %v3184_v36  ;;  %v310_v36 = vld [vmem:[#allocation11 + $0xe8] sm:$0xff] }
 0x284   :  { %v3186_v37 = vpop.f32.mrb[4].mxu1 }
 0x285   :  { %v3188_v39 = vpop.f32.mrb[5].mxu1  ;;  %v829_v23 = vadd.f32 %v3186_v37, %v3217_v52 }
 0x288   :  { %v3190_v40 = vpop.f32.mrb[6].mxu1 }
 0x289   :  { %v3192_v41 = vpop.f32.mrb[7].mxu1 }
 0x28a   :  { %v831_v37 = vadd.f32 %v3217_v52, %v3192_v41 }
 0x28c   :  { %v3194_v42 = vpop.f32.mrb[8].mxu1 }
 0x28d   :  { %v3196_v43 = vpop.f32.mrb[9].mxu1 }
 0x290   :  { %v3198_v44 = vpop.f32.mrb[10].mxu1 }
 0x291   :  { %v3200_v45 = vpop.f32.mrb[11].mxu1 }
 0x294   :  { %v3202_v46 = vpop.f32.mrb[12].mxu1 }
 0x295   :  { %v3204_v47 = vpop.f32.mrb[13].mxu1 }
 0x298   :  { %v3209_v49 = vpop.f32.mrb[14].mxu1 }
 0x299   :  { %v3211_v50 = vpop.f32.mrb[15].mxu1 }
 0x29c   :  { %v2149_v53 = vpop.f32.mrb[16].mxu1 }
 0x29d   :  { %v729_v57 = vpop.f32.mrb[17].mxu1  ;;  %v822_v2 = vadd.f32 %v2149_v53, %v3214_v51 }
 0x29e   :  { %v820_v62 = vadd.f32 %v3214_v51, %v729_v57  ;;  %v825_v57 = vadd.f32 %v3182_v35, %v3217_v52  ;;  %v827_v35 = vadd.f32 %v3217_v52, %v3188_v39  ;;  %v319_v39 = vld [vmem:[#allocation11 + $0x130] sm:$0xff] }
 0x2a0   :  { %931 = vmatprep.mubr.f32.mxu0 %v820_v62  ;;  %1092 = vmatprep.mubr.f32.mxu1 %v820_v62  ;;  %v2152_v3 = vpop.f32.mrb[18].mxu1  ;;  %v305_v62 = vld [vmem:[#allocation11 + $0xc0] sm:$0xff] }
 0x2a1   :  { %932 = vmatmul.mubr.f32.vlgmr.msra.gmra.mrb[32].mxu0 %v819_v63  ;;  %1093 = vmatmul.mubr.f32.vlgmr.msra.gmra.mrb[32].mxu1 %v819_v63  ;;  %v739_v13 = vpop.f32.mrb[19].mxu1  ;;  %v826_v29 = vadd.f32 %v2152_v3, %v3214_v51  ;;  %v308_v63 = vld [vmem:[#allocation11 + $0xd8] sm:$0xff] }
 0x2a2   :  { %937 = vmatprep.mubr.f32.mxu0 %v822_v2  ;;  %1097 = vmatprep.mubr.f32.mxu1 %v822_v2  ;;  %v824_v18 = vadd.f32 %v3214_v51, %v739_v13  ;;  %v2467_v2 = vpack.c.bf16 %v310_v36, %v307_v55  ;;  %v2437_v11 = vpack.c.bf16 %v308_v63, %v305_v62  ;;  %v326_v55 = vld [vmem:[#allocation11 + $0x168] sm:$0xff] }
 0x2a3   :  { %2422 = vmatpush1.bf16.msra.mxu0 %v2421_v1  ;;  %2454 = vmatpush3.bf16.msra.mxu1 %v2451_v32  ;;  %v299_v32 = vld [vmem:[#allocation11 + $0x90] sm:$0xff]  ;;  %v312_v1 = vld [vmem:[#allocation11 + $0xf8] sm:$0xff]  ;;  %v837_v62 = vadd.f32 %v3194_v42, %v3217_v52  ;;  %v843_v42 = vadd.f32 %v3217_v52, %v3204_v47 }
 0x2a4   :  { %2424 = vmatprep.subr.bf16.mxu0 %v2423_v6  ;;  %v2155_v9 = vpop.f32.mrb[20].mxu1  ;;  %2456 = vmatprep.subr.bf16.mxu1 %v2455_v12  ;;  %v2433_v58 = vpack.c.bf16 %v302_v33, %v299_v32  ;;  %v315_v6 = vld [vmem:[#allocation11 + $0x110] sm:$0xff]  ;;  %v328_v32 = vld [vmem:[#allocation11 + $0x178] sm:$0xff]  ;;  %v2445_v33 = vpack.c.bf16 %v320_v22, %v317_v25 }
 0x2a5   :  { %938 = vmatmul.mubr.f32.gmra.mrb[34].mxu0 %v821_v19  ;;  %1098 = vmatmul.mubr.f32.gmra.mrb[34].mxu1 %v821_v19  ;;  %v749_v60 = vpop.f32.mrb[21].mxu1  ;;  %v2439_v15 = vpack.c.bf16 %v315_v6, %v312_v1  ;;  %v2471_v19 = vpack.c.bf16 %v316_v10, %v313_v8  ;;  %v841_v1 = vadd.f32 %v3198_v44, %v3217_v52  ;;  %v3304_v8 = vld [vmem:[#allocation7 + $0x28] sm:$0xff]  ;;  %v3308_v10 = vld [vmem:[#allocation7 + $0x30] sm:$0xff] }
 0x2a6   :  { %943 = vmatprep.mubr.f32.mxu0 %v824_v18  ;;  %1102 = vmatprep.mubr.f32.mxu1 %v824_v18  ;;  %v828_v56 = vadd.f32 %v3214_v51, %v749_v60  ;;  %v318_v18 = vld [vmem:[#allocation11 + $0x128] sm:$0xff]  ;;  %v847_v44 = vadd.f32 %v3217_v52, %v3211_v50  ;;  %v849_v6 = vadd.f32 %v3209_v49, %v3217_v52  ;;  %v3296_v49 = vld [vmem:[#allocation7 + $0x18] sm:$0xff] }
 0x2a7   :  { %2426 = vmatpush1.bf16.msra.mxu0 %v2425_v20  ;;  %2458 = vmatpush3.bf16.msra.mxu1 %v2455_v12  ;;  %v830_v12 = vadd.f32 %v2155_v9, %v3214_v51  ;;  %v3288_v50 = vld [vmem:[#allocation7 + $0x8] sm:$0xff] }
 0x2a8   :  { %2428 = vmatprep.subr.bf16.mxu0 %v2427_v14  ;;  %v3227_v30 = vpop.f32.mrb[22].mxu1  ;;  %2460 = vmatprep.subr.bf16.mxu1 %v2459_v24  ;;  %v321_v14 = vld [vmem:[#allocation11 + $0x140] sm:$0xff] }
 0x2a9   :  { %944 = vmatmul.mubr.f32.gmra.mrb[36].mxu0 %v823_v27  ;;  %1103 = vmatmul.mubr.f32.gmra.mrb[36].mxu1 %v823_v27  ;;  %v759_v53 = vpop.f32.mrb[23].mxu1  ;;  %v2443_v60 = vpack.c.bf16 %v321_v14, %v318_v18  ;;  %v2475_v27 = vpack.c.bf16 %v322_v21, %v319_v39  ;;  %v834_v34 = vadd.f32 %v3227_v30, %v3214_v51  ;;  %v3340_v18 = vld [vmem:[#allocation7 + $0x70] sm:$0xff] }
 0x2aa   :  { %949 = vmatprep.mubr.f32.mxu0 %v826_v29  ;;  %1107 = vmatprep.mubr.f32.mxu1 %v826_v29  ;;  %v832_v9 = vadd.f32 %v3214_v51, %v759_v53  ;;  %v327_v29 = vld [vmem:[#allocation11 + $0x170] sm:$0xff]  ;;  %v2449_v30 = vpack.c.bf16 %v326_v55, %v323_v54  ;;  %3620 = vst [vmem:[#allocation22_spill] sm:$0xff] %v3340_v18 }
 0x2ab   :  { %2430 = vmatpush1.bf16.msra.mxu0 %v2429_v28  ;;  %2462 = vmatpush3.bf16.msra.mxu1 %v2459_v24  ;;  %v2447_v53 = vpack.c.bf16 %v327_v29, %v324_v26 }
 0x2ac   :  { %2432 = vmatprep.subr.bf16.mxu0 %v2431_v31  ;;  %v3232_v59 = vpop.f32.mrb[24].mxu1  ;;  %2464 = vmatprep.subr.bf16.mxu1 %v2463_v48  ;;  %v325_v31 = vld [vmem:[#allocation11 + $0x160] sm:$0xff] }
 0x2ad   :  { %950 = vmatmul.mubr.f32.gmra.mrb[38].mxu0 %v825_v57  ;;  %1108 = vmatmul.mubr.f32.gmra.mrb[38].mxu1 %v825_v57  ;;  %v3234_v3 = vpop.f32.mrb[25].mxu1  ;;  %v2479_v36 = vpack.c.bf16 %v328_v32, %v325_v31  ;;  %v833_v57 = vadd.f32 %v3190_v40, %v3217_v52 }
 0x2ae   :  { %955 = vmatprep.mubr.f32.mxu0 %v828_v56  ;;  %1112 = vmatprep.mubr.f32.mxu1 %v828_v56  ;;  %v836_v41 = vadd.f32 %v3214_v51, %v3234_v3  ;;  %v845_v3 = vadd.f32 %v3202_v46, %v3217_v52  ;;  %v3284_v46 = vld [vmem:[#allocation7] sm:$0xff] }
 0x2af   :  { %2434 = vmatpush1.bf16.msra.mxu0 %v2433_v58  ;;  %2466 = vmatpush3.bf16.msra.mxu1 %v2463_v48  ;;  %v835_v58 = vadd.f32 %v3217_v52, %v3196_v43  ;;  %v839_v43 = vadd.f32 %v3217_v52, %v3200_v45  ;;  %v3300_v52 = vld [vmem:[#allocation7 + $0x20] sm:$0xff] }
 0x2b0   :  { %2436 = vmatprep.subr.bf16.mxu0 %v2435_v61  ;;  %v3239_v13 = vpop.f32.mrb[26].mxu1  ;;  %2468 = vmatprep.subr.bf16.mxu1 %v2467_v2  ;;  %v838_v61 = vadd.f32 %v3232_v59, %v3214_v51 }
 0x2b1   :  { %956 = vmatmul.mubr.f32.gmra.mrb[40].mxu0 %v827_v35  ;;  %1113 = vmatmul.mubr.f32.gmra.mrb[40].mxu1 %v827_v35  ;;  %v3241_v20 = vpop.f32.mrb[27].mxu1  ;;  %v842_v59 = vadd.f32 %v3239_v13, %v3214_v51  ;;  %v3312_v35 = vld [vmem:[#allocation7 + $0x38] sm:$0xff]  ;;  %v3324_v13 = vld [vmem:[#allocation7 + $0x50] sm:$0xff] }
 0x2b2   :  { %961 = vmatprep.mubr.f32.mxu0 %v830_v12  ;;  %1117 = vmatprep.mubr.f32.mxu1 %v830_v12  ;;  %v840_v40 = vadd.f32 %v3214_v51, %v3241_v20  ;;  %v3320_v12 = vld [vmem:[#allocation7 + $0x48] sm:$0xff] }
 0x2b3   :  { %2438 = vmatpush1.bf16.msra.mxu0 %v2437_v11  ;;  %2470 = vmatpush3.bf16.msra.mxu1 %v2467_v2  ;;  %v3316_v11 = vld [vmem:[#allocation7 + $0x40] sm:$0xff] }
 0x2b4   :  { %2440 = vmatprep.subr.bf16.mxu0 %v2439_v15  ;;  %v3246_v24 = vpop.f32.mrb[28].mxu1  ;;  %2472 = vmatprep.subr.bf16.mxu1 %v2471_v19  ;;  %v3328_v15 = vld [vmem:[#allocation7 + $0x58] sm:$0xff] }
 0x2b5   :  { %962 = vmatmul.mubr.f32.gmra.mrb[42].mxu0 %v829_v23  ;;  %1118 = vmatmul.mubr.f32.gmra.mrb[42].mxu1 %v829_v23  ;;  %v789_v28 = vpop.f32.mrb[29].mxu1  ;;  %v846_v45 = vadd.f32 %v3246_v24, %v3214_v51  ;;  %3617 = vst [vmem:[#allocation19_spill] sm:$0xff] %v3328_v15 }
 0x2b6   :  { %967 = vmatprep.mubr.f32.mxu0 %v832_v9  ;;  %1122 = vmatprep.mubr.f32.mxu1 %v832_v9  ;;  %v844_v63 = vadd.f32 %v3214_v51, %v789_v28 }
 0x2b7   :  { %2442 = vmatpush1.bf16.msra.mxu0 %v2441_v38  ;;  %2474 = vmatpush3.bf16.msra.mxu1 %v2471_v19  ;;  %v3344_v19 = vld [vmem:[#allocation7 + $0x78] sm:$0xff] }
 0x2b8   :  { %2444 = vmatprep.subr.bf16.mxu0 %v2443_v60  ;;  %v2170_v48 = vpop.f32.mrb[30].mxu1  ;;  %2476 = vmatprep.subr.bf16.mxu1 %v2475_v27  ;;  %3621 = vst [vmem:[#allocation23_spill] sm:$0xff] %v3344_v19 }
 0x2b9   :  { %968 = vmatmul.mubr.f32.gmra.mrb[44].mxu0 %v831_v37  ;;  %1123 = vmatmul.mubr.f32.gmra.mrb[44].mxu1 %v831_v37  ;;  %v799_v56 = vpop.f32.mrb[31].mxu1  ;;  %v850_v47 = vadd.f32 %v2170_v48, %v3214_v51 }
 0x2ba   :  { %973 = vmatprep.mubr.f32.mxu0 %v834_v34  ;;  %1127 = vmatprep.mubr.f32.mxu1 %v834_v34  ;;  %v848_v2 = vadd.f32 %v3214_v51, %v799_v56  ;;  %v3292_v51 = vld [vmem:[#allocation7 + $0x10] sm:$0xff] }
 0x2bb   :  { %2446 = vmatpush1.bf16.msra.mxu0 %v2445_v33  ;;  %2478 = vmatpush3.bf16.msra.mxu1 %v2475_v27 }
 0x2bc   :  { %2448 = vmatprep.subr.bf16.mxu0 %v2447_v53  ;;  %2480 = vmatprep.subr.bf16.mxu1 %v2479_v36 }
 0x2bd   :  { %974 = vmatmul.mubr.f32.gmra.mrb[46].mxu0 %v833_v57  ;;  %1128 = vmatmul.mubr.f32.gmra.mrb[46].mxu1 %v833_v57 }
 0x2be   :  { %979 = vmatprep.mubr.f32.mxu0 %v836_v41  ;;  %1132 = vmatprep.mubr.f32.mxu1 %v836_v41 }
 0x2bf   :  { %2450 = vmatpush1.bf16.msra.mxu0 %v2449_v30  ;;  %2482 = vmatpush3.bf16.msra.mxu1 %v2479_v36 }
 0x2c1   :  { %980 = vmatmul.mubr.f32.gmra.mrb[48].mxu0 %v835_v58  ;;  %1133 = vmatmul.mubr.f32.gmra.mrb[48].mxu1 %v835_v58 }
 0x2c2   :  { %985 = vmatprep.mubr.f32.mxu0 %v838_v61  ;;  %1137 = vmatprep.mubr.f32.mxu1 %v838_v61 }
 0x2c5   :  { %986 = vmatmul.mubr.f32.gmra.mrb[50].mxu0 %v837_v62  ;;  %1138 = vmatmul.mubr.f32.gmra.mrb[50].mxu1 %v837_v62 }
 0x2c6   :  { %991 = vmatprep.mubr.f32.mxu0 %v840_v40  ;;  %1142 = vmatprep.mubr.f32.mxu1 %v840_v40 }
 0x2c9   :  { %992 = vmatmul.mubr.f32.gmra.mrb[52].mxu0 %v839_v43  ;;  %1143 = vmatmul.mubr.f32.gmra.mrb[52].mxu1 %v839_v43 }
 0x2ca   :  { %997 = vmatprep.mubr.f32.mxu0 %v842_v59  ;;  %1147 = vmatprep.mubr.f32.mxu1 %v842_v59 }
 0x2cd   :  { %998 = vmatmul.mubr.f32.gmra.mrb[54].mxu0 %v841_v1  ;;  %1148 = vmatmul.mubr.f32.gmra.mrb[54].mxu1 %v841_v1 }
 0x2ce   :  { %1003 = vmatprep.mubr.f32.mxu0 %v844_v63  ;;  %1152 = vmatprep.mubr.f32.mxu1 %v844_v63 }
 0x2d1   :  { %1004 = vmatmul.mubr.f32.gmra.mrb[56].mxu0 %v843_v42  ;;  %1153 = vmatmul.mubr.f32.gmra.mrb[56].mxu1 %v843_v42 }
 0x2d2   :  { %1009 = vmatprep.mubr.f32.mxu0 %v846_v45  ;;  %1157 = vmatprep.mubr.f32.mxu1 %v846_v45 }
 0x2d5   :  { %1010 = vmatmul.mubr.f32.gmra.mrb[58].mxu0 %v845_v3  ;;  %1158 = vmatmul.mubr.f32.gmra.mrb[58].mxu1 %v845_v3  ;;  %v3611_v3 = vsub.s32 2, %v3113_v4 }
 0x2d6   :  { %1015 = vmatprep.mubr.f32.mxu0 %v848_v2  ;;  %1162 = vmatprep.mubr.f32.mxu1 %v848_v2 }
 0x2d9   :  { %1016 = vmatmul.mubr.f32.gmra.mrb[60].mxu0 %v847_v44  ;;  %1163 = vmatmul.mubr.f32.gmra.mrb[60].mxu1 %v847_v44 }
 0x2da   :  { %1021 = vmatprep.mubr.f32.mxu0 %v850_v47  ;;  %1167 = vmatprep.mubr.f32.mxu1 %v850_v47  ;;  %v3395_v47 = vld [vmem:[%s3609_s9] sm:$0x7] }
 0x2dd   :  { %1022 = vmatmul.mubr.f32.gmra.mrb[62].mxu0 %v849_v6  ;;  %1168 = vmatmul.mubr.f32.gmra.mrb[62].mxu1 %v849_v6  ;;  %v280_v6 = vld [vmem:[%s3607_s7] sm:$0x7]  ;;  %s2946_s7 = smov [#allocation13]  }
 0x2de   :  { %1253 = vmatprep.mubr.f32.mxu0 %v2945_v0  ;;  %2203 = vmatprep.mubr.f32.mxu1 %v3284_v46  ;;  %s1836_s9 = sshll.u32 %s2946_s7, 4  ;;  %s1837_s9 = int_to_ptr.vmem [resolvable:$true] %s1836_s9 }
 0x2df   :  { %s2901_s16 = scalar_lea.vmem %s1837_s9, 2048  ;;  %p2906_p7 = scmp.lt.s32.totalorder %s1837_s9, %s1837_s9 }
 0x2e0   :  { %p2902_p6 = scmp.ne.s32.totalorder %s1837_s9, %s2901_s16  ;;  %p2907_p8 = scmp.lt.s32.totalorder %s2901_s16, %s2901_s16 }
 0x2e1   :  { %1254 = vmatmul.mubr.f32.vlgmr.msra.gmra.mrb[32].mxu0 %v3284_v46  ;;  %2204 = vmatmul.mubr.f32.vlgmr.msra.gmra.mrb[64].mxu1 %v3288_v50 }
 0x2e2   :  { %1259 = vmatprep.mubr.f32.mxu0 %v2945_v0  ;;  %2206 = vmatprep.mubr.f32.mxu1 %v3292_v51  ;;  %p2908_p9 = por %p2907_p8, %p2906_p7 }
 0x2e4   :  { %p2909_p10 = pnand %p2908_p9, %p2902_p6 }
 0x2e5   :  { %1260 = vmatmul.mubr.f32.gmra.mrb[34].mxu0 %v3288_v50  ;;  %2207 = vmatmul.mubr.f32.gmra.mrb[66].mxu1 %v3296_v49 }
 0x2e6   :  { %1265 = vmatprep.mubr.f32.mxu0 %v2945_v0  ;;  %2209 = vmatprep.mubr.f32.mxu1 %v3300_v52 }
 0x2e9   :  { %1266 = vmatmul.mubr.f32.gmra.mrb[36].mxu0 %v3292_v51  ;;  %2210 = vmatmul.mubr.f32.gmra.mrb[68].mxu1 %v3304_v8 }
 0x2ea   :  { %1271 = vmatprep.mubr.f32.mxu0 %v2945_v0  ;;  %2212 = vmatprep.mubr.f32.mxu1 %v3308_v10 }
 0x2ed   :  { %1272 = vmatmul.mubr.f32.gmra.mrb[38].mxu0 %v3296_v49  ;;  %2213 = vmatmul.mubr.f32.gmra.mrb[70].mxu1 %v3312_v35 }
 0x2ee   :  { %1277 = vmatprep.mubr.f32.mxu0 %v2945_v0  ;;  %2215 = vmatprep.mubr.f32.mxu1 %v3316_v11 }
 0x2f1   :  { %1278 = vmatmul.mubr.f32.gmra.mrb[40].mxu0 %v3300_v52  ;;  %2216 = vmatmul.mubr.f32.gmra.mrb[72].mxu1 %v3320_v12 }
 0x2f2   :  { %1283 = vmatprep.mubr.f32.mxu0 %v2945_v0  ;;  %2218 = vmatprep.mubr.f32.mxu1 %v3324_v13 }
 0x2f5   :  { %1284 = vmatmul.mubr.f32.gmra.mrb[42].mxu0 %v3304_v8  ;;  %2219 = vmatmul.mubr.f32.gmra.mrb[74].mxu1 %v3328_v15 }
 0x2f6   :  { %1289 = vmatprep.mubr.f32.mxu0 %v2945_v0  ;;  %2221 = vmatprep.mubr.f32.mxu1 %v3332_v16 }
 0x2f9   :  { %1290 = vmatmul.mubr.f32.gmra.mrb[44].mxu0 %v3308_v10  ;;  %2222 = vmatmul.mubr.f32.gmra.mrb[76].mxu1 %v3336_v17 }
 0x2fa   :  { %1295 = vmatprep.mubr.f32.mxu0 %v2945_v0  ;;  %2224 = vmatprep.mubr.f32.mxu1 %v3340_v18 }
 0x2fd   :  { %1296 = vmatmul.mubr.f32.gmra.mrb[46].mxu0 %v3312_v35  ;;  %2225 = vmatmul.mubr.f32.gmra.mrb[78].mxu1 %v3344_v19 }
 0x2fe   :  { %1301 = vmatprep.mubr.f32.mxu0 %v2945_v0 }
 0x301   :  { %1302 = vmatmul.mubr.f32.gmra.mrb[48].mxu0 %v3316_v11 }
 0x302   :  { %1307 = vmatprep.mubr.f32.mxu0 %v2945_v0 }
 0x305   :  { %1308 = vmatmul.mubr.f32.gmra.mrb[50].mxu0 %v3320_v12 }
 0x306   :  { %1313 = vmatprep.mubr.f32.mxu0 %v2945_v0 }
 0x309   :  { %1314 = vmatmul.mubr.f32.gmra.mrb[52].mxu0 %v3324_v13 }
 0x30a   :  { %1319 = vmatprep.mubr.f32.mxu0 %v2945_v0 }
 0x30d   :  { %1320 = vmatmul.mubr.f32.gmra.mrb[54].mxu0 %v3328_v15 }
 0x30e   :  { %1325 = vmatprep.mubr.f32.mxu0 %v2945_v0 }
 0x311   :  { %1326 = vmatmul.mubr.f32.gmra.mrb[56].mxu0 %v3332_v16 }
 0x312   :  { %1331 = vmatprep.mubr.f32.mxu0 %v2945_v0 }
 0x315   :  { %1332 = vmatmul.mubr.f32.gmra.mrb[58].mxu0 %v3336_v17 }
 0x316   :  { %1337 = vmatprep.mubr.f32.mxu0 %v2945_v0 }
 0x319   :  { %1338 = vmatmul.mubr.f32.gmra.mrb[60].mxu0 %v3340_v18 }
 0x31a   :  { %1343 = vmatprep.mubr.f32.mxu0 %v2945_v0 }
 0x31d   :  { %1344 = vmatmul.mubr.f32.gmra.mrb[62].mxu0 %v3344_v19 }
 0x374   :  { %v1979_v20 = vpop.f32.mrb[32].mxu1 }
 0x375   :  { %v1980_v14 = vpop.f32.mrb[33].mxu1 }
 0x376   :  { %v3363_v39 = vadd.f32 %v1980_v14, %v1979_v20 }
 0x378   :  { %v1982_v21 = vpop.f32.mrb[34].mxu1 }
 0x379   :  { %v1983_v9 = vpop.f32.mrb[35].mxu1 }
 0x37a   :  { %v3365_v23 = vadd.f32 %v1983_v9, %v1982_v21  ;;  %v855_v21 = vrot.slane %v280_v6, %v3116_v5  ;;  %v1177_v9 = vrot.slane %v3395_v47, %v3116_v5 }
 0x37c   :  { %v1985_v38 = vpop.f32.mrb[36].mxu1 }
 0x37d   :  { %v1986_v24 = vpop.f32.mrb[37].mxu1 }
 0x37e   :  { %v3367_v60 = vadd.f32 %v1986_v24, %v1985_v38  ;;  %v3405_v38 = vrot.slane %v280_v6, %v3611_v3 }
 0x380   :  { %v1988_v25 = vpop.f32.mrb[38].mxu1 }
 0x381   :  { %v1989_v22 = vpop.f32.mrb[39].mxu1 }
 0x382   :  { %v3369_v26 = vadd.f32 %v1989_v22, %v1988_v25 }
 0x384   :  { %v1991_v27 = vpop.f32.mrb[40].mxu1 }
 0x385   :  { %v1992_v0 = vpop.f32.mrb[41].mxu1 }
 0x386   :  { %v3371_v28 = vadd.f32 %v1992_v0, %v1991_v27  ;;  %v3410_v0 = vadd.f32 %v1177_v9, %v855_v21 }
 0x388   :  { %v1994_v29 = vpop.f32.mrb[42].mxu1 }
 0x389   :  { %v1995_v31 = vpop.f32.mrb[43].mxu1 }
 0x38a   :  { %v3373_v32 = vadd.f32 %v1995_v31, %v1994_v29  ;;  %v859_v31 = vrot.slane %v280_v6, %v3122_v7 }
 0x38c   :  { %v1997_v37 = vpop.f32.mrb[44].mxu1 }
 0x38d   :  { %v1998_v33 = vpop.f32.mrb[45].mxu1 }
 0x38e   :  { %v3375_v34 = vadd.f32 %v1998_v33, %v1997_v37  ;;  %v1181_v37 = vrot.slane %v3395_v47, %v3122_v7 }
 0x390   :  { %v2000_v48 = vpop.f32.mrb[46].mxu1 }
 0x391   :  { %v2001_v53 = vpop.f32.mrb[47].mxu1 }
 0x392   :  { %v3377_v54 = vadd.f32 %v2001_v53, %v2000_v48 }
 0x394   :  { %v2003_v55 = vpop.f32.mrb[48].mxu1 }
 0x395   :  { %v2004_v36 = vpop.f32.mrb[49].mxu1 }
 0x396   :  { %v3379_v56 = vadd.f32 %v2004_v36, %v2003_v55 }
 0x398   :  { %v2006_v41 = vpop.f32.mrb[50].mxu1 }
 0x399   :  { %v2007_v57 = vpop.f32.mrb[51].mxu1 }
 0x39a   :  { %v3381_v30 = vadd.f32 %v2007_v57, %v2006_v41  ;;  %v3423_v41 = vadd.f32 %v1181_v37, %v859_v31 }
 0x39c   :  { %v2009_v58 = vpop.f32.mrb[52].mxu1 }
 0x39d   :  { %v2010_v61 = vpop.f32.mrb[53].mxu1 }
 0x39e   :  { %v3383_v40 = vadd.f32 %v2010_v61, %v2009_v58 }
 0x3a0   :  { %v2012_v62 = vpop.f32.mrb[54].mxu1 }
 0x3a1   :  { %v2013_v43 = vpop.f32.mrb[55].mxu1 }
 0x3a2   :  { %v3385_v59 = vadd.f32 %v2013_v43, %v2012_v62 }
 0x3a4   :  { %v2015_v63 = vpop.f32.mrb[56].mxu1 }
 0x3a5   :  { %v2016_v1 = vpop.f32.mrb[57].mxu1 }
 0x3a6   :  { %v3387_v42 = vadd.f32 %v2016_v1, %v2015_v63 }
 0x3a8   :  { %v2018_v45 = vpop.f32.mrb[58].mxu1 }
 0x3a9   :  { %v2019_v2 = vpop.f32.mrb[59].mxu1 }
 0x3aa   :  { %v3390_v44 = vadd.f32 %v2019_v2, %v2018_v45 }
 0x3ac   :  { %v2021_v20 = vpop.f32.mrb[60].mxu1 }
 0x3ad   :  { %v2022_v14 = vpop.f32.mrb[61].mxu1 }
 0x3ae   :  { %v2023_v24 = vadd.f32 %v2022_v14, %v2021_v20 }
 0x3b0   :  { %v3408_v25 = vadd.f32 %v2023_v24, %v3405_v38  ;;  %v2024_v22 = vpop.f32.mrb[62].mxu1 }
 0x3b1   :  { %v2025_v27 = vpop.f32.mrb[63].mxu1 }
 0x3b2   :  { %3622 = vst [vmem:[#allocation24_spill] sm:$0xff] %v3408_v25  ;;  %v2026_v29 = vadd.f32 %v2025_v27, %v2024_v22 }
 0x3b4   :  { %v3416_v5 = vadd.f32 %v2026_v29, %v3405_v38  ;;  %v1255_v33 = vpop.f32.mrb[32].mxu0  ;;  %v3418_v48 = vpop.f32.mrb[64].mxu1 }
 0x3b5   :  { %v2484_v53 = vadd.f32 %v3410_v0, %v1255_v33  ;;  %v1257_v55 = vpop.f32.mrb[33].mxu0  ;;  %v3421_v36 = vpop.f32.mrb[65].mxu1 }
 0x3b6   :  { %3623 = vst [vmem:[#allocation25_spill] sm:$0xff] %v3416_v5  ;;  %v2486_v63 = vadd.f32 %v3423_v41, %v1257_v55 }
 0x3b7   :  { %v1851_v57 = vmul.f32 -1.442695, %v2484_v53 }
 0x3b8   :  { %v1261_v58 = vpop.f32.mrb[34].mxu0  ;;  %v3425_v61 = vpop.f32.mrb[66].mxu1  ;;  %v1867_v21 = vmul.f32 -1.442695, %v2486_v63 }
 0x3b9   :  { %2593 = vpow2.f32 %v1851_v57  ;;  %v2488_v7 = vadd.f32 %v3410_v0, %v1261_v58  ;;  %v1263_v62 = vpop.f32.mrb[35].mxu0  ;;  %v3428_v43 = vpop.f32.mrb[67].mxu1 }
 0x3ba   :  { %v2490_v24 = vadd.f32 %v3423_v41, %v1263_v62 }
 0x3bb   :  { %v1852_v1 = vmul.f32 -1.442695, %v2488_v7 }
 0x3bc   :  { %v1267_v45 = vpop.f32.mrb[36].mxu0  ;;  %v3431_v2 = vpop.f32.mrb[68].mxu1  ;;  %v1868_v58 = vmul.f32 -1.442695, %v2490_v24 }
 0x3bd   :  { %2595 = vpow2.f32 %v1852_v1  ;;  %v2492_v6 = vadd.f32 %v3410_v0, %v1267_v45  ;;  %v1269_v20 = vpop.f32.mrb[37].mxu0  ;;  %v3434_v14 = vpop.f32.mrb[69].mxu1 }
 0x3be   :  { %v2494_v53 = vadd.f32 %v3423_v41, %v1269_v20 }
 0x3bf   :  { %v1853_v9 = vmul.f32 -1.442695, %v2492_v6 }
 0x3c0   :  { %v1273_v22 = vpop.f32.mrb[38].mxu0  ;;  %v3437_v27 = vpop.f32.mrb[70].mxu1 }
 0x3c1   :  { %2597 = vpow2.f32 %v1853_v9  ;;  %v2496_v29 = vadd.f32 %v3410_v0, %v1273_v22  ;;  %v1275_v31 = vpop.f32.mrb[39].mxu0  ;;  %v3440_v37 = vpop.f32.mrb[71].mxu1  ;;  %v1869_v9 = vmul.f32 -1.442695, %v2494_v53 }
 0x3c2   :  { %2599 = vpow2.f32 %v1867_v21  ;;  %v2498_v21 = vadd.f32 %v3423_v41, %v1275_v31 }
 0x3c3   :  { %v2594_v33 = vpop.eup %2593  ;;  %v1854_v55 = vmul.f32 -1.442695, %v2496_v29 }
 0x3c4   :  { %v1559_v57 = vadd.f32 1.0, %v2594_v33  ;;  %v1279_v7 = vpop.f32.mrb[40].mxu0  ;;  %v3443_v63 = vpop.f32.mrb[72].mxu1  ;;  %v1870_v31 = vmul.f32 -1.442695, %v2498_v21 }
 0x3c5   :  { %2601 = vpow2.f32 %v1854_v55  ;;  %v2500_v62 = vadd.f32 %v3410_v0, %v1279_v7  ;;  %v1281_v1 = vpop.f32.mrb[41].mxu0  ;;  %v3446_v45 = vpop.f32.mrb[73].mxu1  ;;  %v3624_v55 = vsub.s32 2, %v3113_v4 }
 0x3c6   :  { %2603 = vrcp.f32 %v1559_v57 }
 0x3c7   :  { %v2596_v6 = vpop.eup %2595  ;;  %v1855_v22 = vmul.f32 -1.442695, %v2500_v62  ;;  %2605 = vpow2.f32 %v1868_v58  ;;  %v3455_v7 = vrot.slane %v3395_v47, %v3624_v55  ;;  %v2502_v58 = vadd.f32 %v3423_v41, %v1281_v1 }
 0x3c8   :  { %v1560_v3 = vadd.f32 1.0, %v2596_v6  ;;  %v1285_v20 = vpop.f32.mrb[42].mxu0  ;;  %v3449_v29 = vpop.f32.mrb[74].mxu1 }
 0x3c9   :  { %2607 = vpow2.f32 %v1855_v22  ;;  %v2504_v24 = vadd.f32 %v3410_v0, %v1285_v20  ;;  %v1287_v33 = vpop.f32.mrb[43].mxu0  ;;  %v3457_v57 = vpop.f32.mrb[75].mxu1  ;;  %v1871_v21 = vmul.f32 -1.442695, %v2502_v58 }
 0x3ca   :  { %2609 = vrcp.f32 %v1560_v3  ;;  %v2506_v22 = vadd.f32 %v3423_v41, %v1287_v33  ;;  %v1417_v3 = vadd.f32 %v3421_v36, %v3455_v7  ;;  %v1095_v33 = vadd.f32 %v3363_v39, %v3405_v38 }
 0x3cb   :  { %v2598_v53 = vpop.eup %2597  ;;  %2611 = vpow2.f32 %v1869_v9  ;;  %v1856_v62 = vmul.f32 -1.442695, %v2504_v24 }
 0x3cc   :  { %v2600_v6 = vpop.eup %2599  ;;  %v1561_v19 = vadd.f32 1.0, %v2598_v53  ;;  %v1291_v20 = vpop.f32.mrb[44].mxu0 }
 0x3cd   :  { %v3461_v18 = vpop.f32.mrb[76].mxu1  ;;  %2613 = vpow2.f32 %v1856_v62  ;;  %v2508_v4 = vadd.f32 %v3410_v0, %v1291_v20  ;;  %v1293_v47 = vpop.f32.mrb[45].mxu0  ;;  %v1671_v1 = vadd.f32 1.0, %v2600_v6  ;;  %v1872_v62 = vmul.f32 -1.442695, %v2506_v22 }
 0x3ce   :  { %v3466_v55 = vpop.f32.mrb[77].mxu1  ;;  %2615 = vrcp.f32 %v1561_v19  ;;  %v1422_v20 = vadd.f32 %v3418_v48, %v3455_v7  ;;  %v1100_v48 = vadd.f32 %v3365_v23, %v3405_v38  ;;  %v1105_v23 = vadd.f32 %v3367_v60, %v3405_v38 }
 0x3cf   :  { %v2602_v9 = vpop.eup %2601  ;;  %2617 = vpow2.f32 %v1870_v31  ;;  %v1857_v24 = vmul.f32 -1.442695, %v2508_v4 }
 0x3d0   :  { %v2604_v53 = vpop.eup %2603  ;;  %v1562_v17 = vadd.f32 1.0, %v2602_v9  ;;  %v1297_v5 = vpop.f32.mrb[46].mxu0 }
 0x3d1   :  { %v2226_v16 = vpop.f32.mrb[78].mxu1  ;;  %2619 = vpow2.f32 %v1857_v24  ;;  %v1719_v36 = vmul.f32 %v2604_v53, %v1417_v3  ;;  %v2512_v19 = vadd.f32 %v3410_v0, %v1297_v5  ;;  %v1299_v25 = vpop.f32.mrb[47].mxu0 }
 0x3d2   :  { %v3474_v31 = vadd.f32 %v2226_v16, %v3455_v7  ;;  %v1486_v58 = vpop.f32.mrb[79].mxu1  ;;  %v2606_v6 = vpop.eup %2605  ;;  %2621 = vrcp.f32 %v1562_v17  ;;  %v1427_v16 = vadd.f32 %v3428_v43, %v3455_v7  ;;  %v2510_v17 = vadd.f32 %v3423_v41, %v1293_v47 }
 0x3d3   :  { %v3477_v39 = vadd.f32 %v1486_v58, %v3455_v7  ;;  %v2608_v22 = vpop.eup %2607  ;;  %2623 = vrcp.f32 %v1671_v1  ;;  %v1735_v4 = vadd.f32 %v1719_v36, %v1095_v33  ;;  %v1858_v5 = vmul.f32 -1.442695, %v2512_v19 }
 0x3d4   :  { %3625 = vst [vmem:[#allocation26_spill] sm:$0xff] %v3474_v31  ;;  %v2610_v9 = vpop.eup %2609  ;;  %v1563_v3 = vadd.f32 1.0, %v2608_v22  ;;  %2625 = vpow2.f32 %v1871_v21  ;;  %v1303_v24 = vpop.f32.mrb[48].mxu0  ;;  %v1672_v31 = vadd.f32 1.0, %v2606_v6  ;;  %v1432_v43 = vadd.f32 %v3425_v61, %v3455_v7 }
 0x3d5   :  { %3626 = vst [vmem:[#allocation27_spill] sm:$0xff] %v3477_v39  ;;  %v2612_v53 = vpop.eup %2611  ;;  %2627 = vpow2.f32 %v1872_v62  ;;  %v1720_v58 = vmul.f32 %v2610_v9, %v1422_v20  ;;  %v1305_v15 = vpop.f32.mrb[49].mxu0  ;;  %v2516_v21 = vadd.f32 %v3410_v0, %v1303_v24  ;;  %v1873_v20 = vmul.f32 -1.442695, %v2510_v17 }
 0x3d6   :  { %2629 = vrcp.f32 %v1563_v3  ;;  %v1673_v36 = vadd.f32 1.0, %v2612_v53  ;;  %v2514_v6 = vadd.f32 %v3423_v41, %v1299_v25 }
 0x3d7   :  { %v2614_v39 = vpop.eup %2613  ;;  %v1736_v1 = vadd.f32 %v1720_v58, %v1100_v48  ;;  %2631 = vtanh.f32 %v1735_v4  ;;  %v1110_v48 = vadd.f32 %v3369_v26, %v3405_v38  ;;  %v1859_v4 = vmul.f32 -1.442695, %v2516_v21 }
 0x3d8   :  { %v2616_v33 = vpop.eup %2615  ;;  %v1564_v19 = vadd.f32 1.0, %v2614_v39  ;;  %2633 = vpow2.f32 %v1858_v5  ;;  %v1309_v62 = vpop.f32.mrb[50].mxu0  ;;  %v1874_v25 = vmul.f32 -1.442695, %v2514_v6  ;;  %v1437_v58 = vadd.f32 %v3434_v14, %v3455_v7 }
 0x3d9   :  { %v2618_v47 = vpop.eup %2617  ;;  %2635 = vrcp.f32 %v1672_v31  ;;  %v1721_v22 = vmul.f32 %v2616_v33, %v1427_v16  ;;  %v1311_v9 = vpop.f32.mrb[51].mxu0  ;;  %v2520_v24 = vadd.f32 %v3410_v0, %v1309_v62  ;;  %v1442_v14 = vadd.f32 %v3431_v2, %v3455_v7 }
 0x3da   :  { %2637 = vrcp.f32 %v1564_v19  ;;  %v1674_v5 = vadd.f32 1.0, %v2618_v47  ;;  %v2518_v47 = vadd.f32 %v3423_v41, %v1305_v15 }
 0x3db   :  { %v2620_v60 = vpop.eup %2619  ;;  %2639 = vtanh.f32 %v1736_v1  ;;  %v1737_v39 = vadd.f32 %v1721_v22, %v1105_v23  ;;  %v1860_v19 = vmul.f32 -1.442695, %v2520_v24 }
 0x3dc   :  { %v2622_v3 = vpop.eup %2621  ;;  %2641 = vrcp.f32 %v1673_v36  ;;  %v1565_v61 = vadd.f32 1.0, %v2620_v60  ;;  %v1315_v31 = vpop.f32.mrb[52].mxu0  ;;  %v1115_v36 = vadd.f32 %v3371_v28, %v3405_v38  ;;  %v1120_v60 = vadd.f32 %v3373_v32, %v3405_v38 }
 0x3dd   :  { %v2624_v53 = vpop.eup %2623  ;;  %2643 = vpow2.f32 %v1873_v20  ;;  %v1722_v16 = vmul.f32 %v2622_v3, %v1432_v43  ;;  %v3493_v17 = vpop.f32.mrb[53].mxu0  ;;  %v2524_v21 = vadd.f32 %v3410_v0, %v1315_v31  ;;  %v1875_v32 = vmul.f32 -1.442695, %v2518_v47 }
 0x3de   :  { %v2626_v26 = vpop.eup %2625  ;;  %2645 = vrcp.f32 %v1565_v61 }
 0x3df   :  { %v2628_v1 = vpop.eup %2627  ;;  %2647 = vpow2.f32 %v1859_v4  ;;  %v1738_v23 = vadd.f32 %v1722_v16, %v1110_v48  ;;  %v1675_v48 = vadd.f32 1.0, %v2626_v26 }
 0x3e0   :  { %v2630_v33 = vpop.eup %2629  ;;  %2649 = vrcp.f32 %v1674_v5  ;;  %v1321_v62 = vpop.f32.mrb[54].mxu0  ;;  %v1861_v5 = vmul.f32 -1.442695, %v2524_v21  ;;  %v1676_v24 = vadd.f32 1.0, %v2628_v1 }
 0x3e1   :  { %v2632_v43 = vpop.eup %2631  ;;  %2651 = vpow2.f32 %v1874_v25  ;;  %v1723_v20 = vmul.f32 %v2630_v33, %v1437_v58  ;;  %v3503_v6 = vpop.f32.mrb[55].mxu0  ;;  %v1447_v25 = vadd.f32 %v3440_v37, %v3455_v7 }
 0x3e2   :  { %v2634_v22 = vpop.eup %2633  ;;  %v1767_v28 = vsub.f32 %v3284_v46, %v2632_v43  ;;  %2653 = vtanh.f32 %v1738_v23  ;;  %v2528_v46 = vadd.f32 %v3410_v0, %v1321_v62 }
 0x3e3   :  { %v2636_v4 = vpop.eup %2635  ;;  %v1566_v3 = vadd.f32 1.0, %v2634_v22  ;;  %2655 = vtanh.f32 %v1737_v39  ;;  %v1739_v61 = vadd.f32 %v1723_v20, %v1115_v36 }
 0x3e4   :  { %v2638_v15 = vpop.eup %2637  ;;  %v1783_v31 = vmul.f32 %v2624_v53, %v1767_v28  ;;  %2657 = vpow2.f32 %v1860_v19  ;;  %v1327_v2 = vpop.f32.mrb[56].mxu0  ;;  %v2522_v53 = vadd.f32 %v3423_v41, %v1311_v9  ;;  %v1862_v20 = vmul.f32 -1.442695, %v2528_v46 }
 0x3e5   :  { %v2640_v16 = vpop.eup %2639  ;;  %2659 = vrcp.f32 %v1566_v3  ;;  %v1724_v58 = vmul.f32 %v2638_v15, %v1442_v14  ;;  %v3511_v26 = vpop.f32.mrb[57].mxu0  ;;  %v2532_v19 = vadd.f32 %v3410_v0, %v1327_v2  ;;  %v1125_v14 = vadd.f32 %v3375_v34, %v3405_v38 }
 0x3e6   :  { %v2642_v23 = vpop.eup %2641  ;;  %2661 = vrcp.f32 %v1675_v48  ;;  %v1768_v39 = vsub.f32 %v3288_v50, %v2640_v16  ;;  %v1799_v21 = vadd.f32 %v2632_v43, %v1783_v31  ;;  %v1452_v15 = vadd.f32 %v3437_v27, %v3455_v7 }
 0x3e7   :  { %v2644_v1 = vpop.eup %2643  ;;  %2663 = vpow2.f32 %v1861_v5  ;;  %v1740_v33 = vadd.f32 %v1724_v58, %v1120_v60  ;;  %v1876_v60 = vmul.f32 -1.442695, %v2522_v53  ;;  %v1863_v34 = vmul.f32 -1.442695, %v2532_v19 }
 0x3e8   :  { %v2646_v36 = vpop.eup %2645  ;;  %2665 = vrcp.f32 %v1676_v24  ;;  %v1784_v37 = vmul.f32 %v2636_v4, %v1768_v39  ;;  %1815 = vst [vmem:[#allocation13] sm:$0xff] %v1799_v21  ;;  %v1333_v47 = vpop.f32.mrb[58].mxu0  ;;  %v2526_v4 = vadd.f32 %v3423_v41, %v3493_v17  ;;  %v1130_v2 = vadd.f32 %v3377_v54, %v3405_v38 }
 0x3e9   :  { %v2648_v62 = vpop.eup %2647  ;;  %2667 = vpow2.f32 %v1875_v32  ;;  %v1725_v50 = vmul.f32 %v2646_v36, %v1447_v25  ;;  %v3518_v43 = vpop.f32.mrb[59].mxu0  ;;  %v1677_v32 = vadd.f32 1.0, %v2644_v1  ;;  %v2530_v54 = vadd.f32 %v3423_v41, %v3503_v6 }
 0x3ea   :  { %v2650_v9 = vpop.eup %2649  ;;  %v1800_v22 = vadd.f32 %v2640_v16, %v1784_v37  ;;  %v1567_v48 = vadd.f32 1.0, %v2648_v62  ;;  %2669 = vtanh.f32 %v1740_v33  ;;  %v1877_v53 = vmul.f32 -1.442695, %v2526_v4 }
 0x3eb   :  { %v2652_v28 = vpop.eup %2651  ;;  %2671 = vtanh.f32 %v1739_v61  ;;  %v1741_v3 = vadd.f32 %v1725_v50, %v1125_v14  ;;  %v2536_v37 = vadd.f32 %v3410_v0, %v1333_v47 }
 0x3ec   :  { %v2654_v5 = vpop.eup %2653  ;;  %1816 = vst [vmem:[#allocation13 + $0x8] sm:$0xff] %v1800_v22  ;;  %2673 = vrcp.f32 %v1567_v48  ;;  %v1339_v24 = vpop.f32.mrb[60].mxu0 }
 0x3ed   :  { %v2656_v31 = vpop.eup %2655  ;;  %v1770_v25 = vsub.f32 %v3296_v49, %v2654_v5  ;;  %2675 = vpow2.f32 %v1862_v20  ;;  %v2540_v16 = vadd.f32 %v3410_v0, %v1339_v24  ;;  %v1341_v17 = vpop.f32.mrb[61].mxu0  ;;  %v1135_v24 = vadd.f32 %v3379_v56, %v3405_v38 }
 0x3ee   :  { %v2658_v61 = vpop.eup %2657  ;;  %v1769_v58 = vsub.f32 %v3292_v51, %v2656_v31  ;;  %2677 = vpow2.f32 %v1876_v60  ;;  %v3530_v46 = vadd.f32 %v3423_v41, %v1341_v17  ;;  %v1678_v51 = vadd.f32 1.0, %v2652_v28 }
 0x3ef   :  { %v2660_v27 = vpop.eup %2659  ;;  %v1786_v39 = vmul.f32 %v2650_v9, %v1770_v25  ;;  %v1568_v21 = vadd.f32 1.0, %v2658_v61  ;;  %2679 = vpow2.f32 %v1863_v34  ;;  %v1864_v28 = vmul.f32 -1.442695, %v2536_v37 }
 0x3f0   :  { %v2662_v49 = vpop.eup %2661  ;;  %v1785_v33 = vmul.f32 %v2642_v23, %v1769_v58  ;;  %v1726_v36 = vmul.f32 %v2660_v27, %v1452_v15  ;;  %v1345_v1 = vpop.f32.mrb[62].mxu0  ;;  %v1457_v23 = vadd.f32 %v3446_v45, %v3455_v7  ;;  %v1878_v34 = vmul.f32 -1.442695, %v2530_v54 }
 0x3f1   :  { %v2664_v19 = vpop.eup %2663  ;;  %v1802_v62 = vadd.f32 %v2654_v5, %v1786_v39  ;;  %2681 = vrcp.f32 %v1568_v21  ;;  %v2544_v14 = vadd.f32 %v3410_v0, %v1345_v1  ;;  %v1347_v20 = vpop.f32.mrb[63].mxu0  ;;  %v2534_v0 = vadd.f32 %v3423_v41, %v3511_v26 }
 0x3f2   :  { %v2666_v50 = vpop.eup %2665  ;;  %2683 = vrcp.f32 %v1677_v32  ;;  %v1801_v9 = vadd.f32 %v2656_v31, %v1785_v33  ;;  %v1569_v22 = vadd.f32 1.0, %v2664_v19  ;;  %v1742_v48 = vadd.f32 %v1726_v36, %v1130_v2 }
 0x3f3   :  { %v2668_v6 = vpop.eup %2667  ;;  %1818 = vst [vmem:[#allocation13 + $0x18] sm:$0xff] %v1802_v62  ;;  %2685 = vpow2.f32 %v1877_v53  ;;  %v3539_v47 = vadd.f32 %v3423_v41, %v1347_v20  ;;  %v1462_v31 = vadd.f32 %v3443_v63, %v3455_v7  ;;  %v1865_v26 = vmul.f32 -1.442695, %v2540_v16 }
 0x3f4   :  { %v2670_v60 = vpop.eup %2669  ;;  %1817 = vst [vmem:[#allocation13 + $0x10] sm:$0xff] %v1801_v9  ;;  %2687 = vrcp.f32 %v1569_v22  ;;  %v1679_v21 = vadd.f32 1.0, %v2668_v6  ;;  %v1467_v63 = vadd.f32 %v3457_v57, %v3455_v7  ;;  %v2538_v16 = vadd.f32 %v3423_v41, %v3518_v43 }
 0x3f5   :  { %v2672_v4 = vpop.eup %2671  ;;  %2689 = vrcp.f32 %v1678_v51  ;;  %v1772_v5 = vsub.f32 %v3304_v8, %v2670_v60  ;;  %v1879_v8 = vmul.f32 -1.442695, %v2534_v0  ;;  %v1140_v33 = vadd.f32 %v3381_v30, %v3405_v38 }
 0x3f6   :  { %v2674_v15 = vpop.eup %2673  ;;  %v1771_v45 = vsub.f32 %v3300_v52, %v2672_v4  ;;  %2691 = vtanh.f32 %v1742_v48  ;;  %v1866_v19 = vmul.f32 -1.442695, %v2544_v14  ;;  %v1145_v62 = vadd.f32 %v3383_v40, %v3405_v38 }
 0x3f7   :  { %v2676_v2 = vpop.eup %2675  ;;  %v1788_v25 = vmul.f32 %v2666_v50, %v1772_v5  ;;  %2693 = vtanh.f32 %v1741_v3  ;;  %v1727_v17 = vmul.f32 %v2674_v15, %v1457_v23  ;;  %v1880_v41 = vmul.f32 -1.442695, %v2538_v16 }
 0x3f8   :  { %v2678_v61 = vpop.eup %2677  ;;  %v1787_v32 = vmul.f32 %v2662_v49, %v1771_v45  ;;  %v1570_v58 = vadd.f32 1.0, %v2676_v2  ;;  %2695 = vpow2.f32 %v1864_v28  ;;  %v1472_v9 = vadd.f32 %v3449_v29, %v3455_v7 }
 0x3f9   :  { %v1804_v27 = vadd.f32 %v2670_v60, %v1788_v25  ;;  %2697 = vpow2.f32 %v1878_v34  ;;  %v1743_v39 = vadd.f32 %v1727_v17, %v1135_v24  ;;  %v2680_v56 = vpop.eup %2679  ;;  %v1680_v54 = vadd.f32 1.0, %v2678_v61 }
 0x3fa   :  { %v1803_v52 = vadd.f32 %v2672_v4, %v1787_v32  ;;  %2699 = vrcp.f32 %v1570_v58  ;;  %v1571_v3 = vadd.f32 1.0, %v2680_v56  ;;  %v1881_v0 = vmul.f32 -1.442695, %v3530_v46 }
 0x3fb   :  { %v2682_v53 = vpop.eup %2681  ;;  %1820 = vst [vmem:[#allocation13 + $0x28] sm:$0xff] %v1804_v27  ;;  %2701 = vpow2.f32 %v1865_v26  ;;  %v1150_v29 = vadd.f32 %v3385_v59, %v3405_v38  ;;  %v1882_v32 = vmul.f32 -1.442695, %v3539_v47 }
 0x3fc   :  { %v2684_v49 = vpop.eup %2683  ;;  %1819 = vst [vmem:[#allocation13 + $0x20] sm:$0xff] %v1803_v52  ;;  %2703 = vpow2.f32 %v1879_v8  ;;  %v1728_v36 = vmul.f32 %v2682_v53, %v1462_v31 }
 0x3fd   :  { %v2686_v37 = vpop.eup %2685  ;;  %2705 = vrcp.f32 %v1571_v3 }
 0x3fe   :  { %v2688_v1 = vpop.eup %2687  ;;  %2707 = vrcp.f32 %v1679_v21  ;;  %v1744_v57 = vadd.f32 %v1728_v36, %v1140_v33  ;;  %v1681_v6 = vadd.f32 1.0, %v2686_v37 }
 0x3ff   :  { %v2690_v51 = vpop.eup %2689  ;;  %2709 = vrcp.f32 %v1680_v54  ;;  %v1729_v43 = vmul.f32 %v2688_v1, %v1467_v63 }
 0x400   :  { %v2692_v20 = vpop.eup %2691  ;;  %2711 = vtanh.f32 %v1744_v57 }
 0x401   :  { %v2694_v50 = vpop.eup %2693  ;;  %v1774_v30 = vsub.f32 %v3312_v35, %v2692_v20  ;;  %2713 = vtanh.f32 %v1743_v39  ;;  %v1745_v22 = vadd.f32 %v1729_v43, %v1145_v62  ;;  %v1477_v35 = vadd.f32 %v3466_v55, %v3455_v7 }
 0x402   :  { %v2696_v48 = vpop.eup %2695  ;;  %v1773_v14 = vsub.f32 %v3308_v10, %v2694_v50  ;;  %2715 = vpow2.f32 %v1866_v19  ;;  %v1155_v55 = vadd.f32 %v3387_v42, %v3405_v38  ;;  %v1482_v42 = vadd.f32 %v3461_v18, %v3455_v7 }
 0x403   :  { %v2698_v23 = vpop.eup %2697  ;;  %v1790_v40 = vmul.f32 %v2690_v51, %v1774_v30  ;;  %v1572_v60 = vadd.f32 1.0, %v2696_v48  ;;  %2717 = vpow2.f32 %v1880_v41  ;;  %v3627_v51 = vld [vmem:[#allocation27_spill] sm:$0xff] }
 0x404   :  { %v2700_v28 = vpop.eup %2699  ;;  %v1789_v4 = vmul.f32 %v2684_v49, %v1773_v14  ;;  %2719 = vtanh.f32 %v1745_v22  ;;  %v1682_v2 = vadd.f32 1.0, %v2698_v23  ;;  %v3628_v41 = vld [vmem:[#allocation19_spill] sm:$0xff]  ;;  %v3630_v22 = vld [vmem:[#allocation20_spill] sm:$0xff] }
 0x405   :  { %v2702_v5 = vpop.eup %2701  ;;  %v1806_v34 = vadd.f32 %v2692_v20, %v1790_v40  ;;  %2721 = vrcp.f32 %v1572_v60  ;;  %v1730_v10 = vmul.f32 %v2700_v28, %v1472_v9  ;;  %v3631_v60 = vld [vmem:[#allocation26_spill] sm:$0xff] }
 0x406   :  { %v2704_v15 = vpop.eup %2703  ;;  %2723 = vrcp.f32 %v1681_v6  ;;  %v1805_v24 = vadd.f32 %v2694_v50, %v1789_v4  ;;  %v1573_v45 = vadd.f32 1.0, %v2702_v5 }
 0x407   :  { %v2706_v31 = vpop.eup %2705  ;;  %1822 = vst [vmem:[#allocation13 + $0x38] sm:$0xff] %v1806_v34  ;;  %2725 = vpow2.f32 %v1881_v0  ;;  %v1746_v46 = vadd.f32 %v1730_v10, %v1150_v29  ;;  %v1683_v17 = vadd.f32 1.0, %v2704_v15  ;;  %v3633_v34 = vld [vmem:[#allocation21_spill] sm:$0xff] }
 0x408   :  { %v2708_v25 = vpop.eup %2707  ;;  %1821 = vst [vmem:[#allocation13 + $0x30] sm:$0xff] %v1805_v24  ;;  %2727 = vrcp.f32 %v1573_v45  ;;  %v1731_v26 = vmul.f32 %v2706_v31, %v1477_v35  ;;  %v3632_v35 = vld [vmem:[#allocation25_spill] sm:$0xff]  ;;  %v3634_v31 = vld [vmem:[#allocation22_spill] sm:$0xff] }
 0x409   :  { %v2710_v59 = vpop.eup %2709  ;;  %2729 = vtanh.f32 %v1746_v46 }
 0x40a   :  { %v2712_v61 = vpop.eup %2711  ;;  %v1747_v58 = vadd.f32 %v1731_v26, %v1155_v55  ;;  %2731 = vrcp.f32 %v1682_v2 }
 0x40b   :  { %v2714_v8 = vpop.eup %2713  ;;  %v1776_v27 = vsub.f32 %v3320_v12, %v2712_v61 }
 0x40c   :  { %v2716_v39 = vpop.eup %2715  ;;  %v1775_v56 = vsub.f32 %v3316_v11, %v2714_v8  ;;  %2733 = vtanh.f32 %v1747_v58  ;;  %v1160_v11 = vadd.f32 %v3390_v44, %v3405_v38  ;;  %v3629_v44 = vld [vmem:[#allocation24_spill] sm:$0xff] }
 0x40d   :  { %v2718_v21 = vpop.eup %2717  ;;  %2735 = vrcp.f32 %v1683_v17  ;;  %v1792_v52 = vmul.f32 %v2710_v59, %v1776_v27  ;;  %v1574_v63 = vadd.f32 1.0, %v2716_v39  ;;  %v3635_v17 = vld [vmem:[#allocation23_spill] sm:$0xff] }
 0x40e   :  { %v2720_v53 = vpop.eup %2719  ;;  %v1791_v54 = vmul.f32 %v2708_v25, %v1775_v56  ;;  %2737 = vpow2.f32 %v1882_v32  ;;  %v1684_v37 = vadd.f32 1.0, %v2718_v21 }
 0x40f   :  { %v2722_v47 = vpop.eup %2721  ;;  %v1808_v3 = vadd.f32 %v2712_v61, %v1792_v52  ;;  %2739 = vrcp.f32 %v1574_v63  ;;  %v1777_v16 = vsub.f32 %v3324_v13, %v2720_v53 }
 0x410   :  { %v2724_v12 = vpop.eup %2723  ;;  %v1807_v49 = vadd.f32 %v2714_v8, %v1791_v54  ;;  %v1732_v33 = vmul.f32 %v2722_v47, %v1482_v42 }
 0x411   :  { %v2726_v18 = vpop.eup %2725  ;;  %1824 = vst [vmem:[#allocation13 + $0x48] sm:$0xff] %v1808_v3  ;;  %v1793_v7 = vmul.f32 %v2724_v12, %v1777_v16 }
 0x412   :  { %v2728_v36 = vpop.eup %2727  ;;  %1823 = vst [vmem:[#allocation13 + $0x40] sm:$0xff] %v1807_v49  ;;  %v1748_v1 = vadd.f32 %v1732_v33, %v1160_v11  ;;  %v1685_v20 = vadd.f32 1.0, %v2726_v18 }
 0x413   :  { %v2730_v57 = vpop.eup %2729  ;;  %v1809_v19 = vadd.f32 %v2720_v53, %v1793_v7  ;;  %v1733_v62 = vmul.f32 %v2728_v36, %v3627_v51 }
 0x414   :  { %v1778_v43 = vsub.f32 %v3628_v41, %v2730_v57  ;;  %2741 = vtanh.f32 %v1748_v1  ;;  %v2732_v13 = vpop.eup %2731 }
 0x415   :  { %1825 = vst [vmem:[#allocation13 + $0x50] sm:$0xff] %v1809_v19  ;;  %v1749_v38 = vadd.f32 %v1733_v62, %v3629_v44  ;;  %2743 = vrcp.f32 %v1684_v37 }
 0x416   :  { %v2734_v50 = vpop.eup %2733  ;;  %v1794_v30 = vmul.f32 %v2732_v13, %v1778_v43 }
 0x417   :  { %v2736_v9 = vpop.eup %2735  ;;  %v1779_v48 = vsub.f32 %v3630_v22, %v2734_v50  ;;  %2745 = vtanh.f32 %v1749_v38 }
 0x418   :  { %v2738_v6 = vpop.eup %2737  ;;  %v1810_v14 = vadd.f32 %v2730_v57, %v1794_v30  ;;  %2747 = vrcp.f32 %v1685_v20 }
 0x419   :  { %v2740_v23 = vpop.eup %2739  ;;  %v1795_v40 = vmul.f32 %v2736_v9, %v1779_v48  ;;  %v1686_v4 = vadd.f32 1.0, %v2738_v6 }
 0x41a   :  { %1826 = vst [vmem:[#allocation13 + $0x58] sm:$0xff] %v1810_v14  ;;  %v1734_v0 = vmul.f32 %v2740_v23, %v3631_v60 }
 0x41b   :  { %v1811_v28 = vadd.f32 %v2734_v50, %v1795_v40 }
 0x41c   :  { %v1750_v5 = vadd.f32 %v1734_v0, %v3632_v35 }
 0x41d   :  { %1827 = vst [vmem:[#allocation13 + $0x60] sm:$0xff] %v1811_v28 }
 0x41e   :  { %v2742_v29 = vpop.eup %2741  ;;  %2749 = vtanh.f32 %v1750_v5 }
 0x41f   :  { %v1780_v10 = vsub.f32 %v3633_v34, %v2742_v29  ;;  %v2744_v15 = vpop.eup %2743  ;;  %2751 = vrcp.f32 %v1686_v4 }
 0x421   :  { %v2746_v24 = vpop.eup %2745  ;;  %v1796_v45 = vmul.f32 %v2744_v15, %v1780_v10 }
 0x422   :  { %v1781_v2 = vsub.f32 %v3634_v31, %v2746_v24  ;;  %v2748_v46 = vpop.eup %2747 }
 0x423   :  { %v1812_v25 = vadd.f32 %v2742_v29, %v1796_v45 }
 0x424   :  { %v1797_v55 = vmul.f32 %v2748_v46, %v1781_v2 }
 0x425   :  { %1828 = vst [vmem:[#allocation13 + $0x68] sm:$0xff] %v1812_v25 }
 0x426   :  { %v1813_v26 = vadd.f32 %v2746_v24, %v1797_v55 }
 0x428   :  { %v2750_v59 = vpop.eup %2749  ;;  %1829 = vst [vmem:[#allocation13 + $0x70] sm:$0xff] %v1813_v26 }
 0x429   :  { %v1782_v61 = vsub.f32 %v3635_v17, %v2750_v59  ;;  %v2752_v32 = vpop.eup %2751 }
 0x42b   :  { %v1798_v58 = vmul.f32 %v2752_v32, %v1782_v61 }
 0x42d   :  { %v1814_v8 = vadd.f32 %v2750_v59, %v1798_v58 }
 0x42f   :  { %1830 = vst [vmem:[#allocation13 + $0x78] sm:$0xff] %v1814_v8 }
 0x430   :  { %2912 = shalt.err (!%p2909_p10)
}
 0x431   :  { %s2913_s24 = scalar_lea.hbm %s3610_s10, 2048 }
 0x432   :  { %p2914_p11 = scmp.ne.s32.totalorder %s3610_s10, %s2913_s24  ;;  %p2917_p12 = scmp.lt.u32.totalorder %s2913_s24, %s3610_s10 }
 0x434   :  { %p2919_p13 = pnand %p2917_p12, %p2914_p11 }
 0x436   :  { %2922 = shalt.err (!%p2919_p13)
}
 0x437   :  { %1842 = dma.vmem_to_hbm [thread:$0]  %s1837_s9, 2048, %s3610_s10, [#allocation4], %s2935_s25, %s2935_s25, %s2936_s26  }
 0x438   :  { %2931 = dma.done.wait [#allocation4], 2048  }
 0x439   :  { %2932 = vsyncadd [#allocation4], 4294965248 }
 0x43a   :  { %1846 = vsyncpa [#allocation3], 1 }
 0x43b   :  { %1847 = vsyncpa [#allocation6], 1 }
 0x43c   :  { %1848 = vsyncpa [#allocation9], 1 }
 0x43d   :  { %1849 = vsyncpa [#allocation12], 1 }
 0x43e   :  { %1850 = vsyncpa [#allocation4], 1 }

</bundles_post_ra>
